<compile_context>
chip_gen: v7x
topology: tpu7x:2x2x1
jax: 0.10.0
libtpu: 0.0.40
codegen_flags: <defaults>
</compile_context>

<pallas_src>
import jax
import jax.numpy as jnp
from jax import lax
from jax.experimental import pallas as pl
from jax.experimental.pallas import tpu as pltpu


GEM_EPS = 1e-6
NORM_EPS = 1e-12


def _round_up(x, m):
    return (x + m - 1) // m * m


def _vmem_capacity_bytes():
    """Physical VMEM per core; conservative (v7x-sized) fallback if the query fails."""
    try:
        return int(pltpu.get_tpu_info().vmem_capacity_bytes)
    except Exception:
        return 64 * 1024 * 1024


def _is_v5e():
    try:
        kind = jax.devices()[0].device_kind.lower()
    except Exception:
        return False
    return ("v5 lite" in kind) or ("v5e" in kind) or ("v5litepod" in kind)


def _choose_c_chunk(c):
    """Channel-chunk size: a multiple of 128 dividing C (lane-dense), else full C."""
    if c % 128 != 0:
        return c                      # full-extent block (no lane-divisibility needed)
    if c % 256 == 0 and c > 256:
        return 256
    return 128 if c > 128 else c


def _vmem_estimate(tb, hw, tc, e, ncp, x_itemsize, n_x_buf):
    """Conservative VMEM footprint for one pipeline stage, incl. tile padding."""
    hwp = _round_up(hw, 16)           # sublane padding (bf16 packs 16 rows/tile)
    tcp = _round_up(tc, 128)          # lane padding
    ep = _round_up(e, 128)
    x_tile = tb * hwp * tcp
    return (n_x_buf * x_tile * x_itemsize      # pipelined x tile buffers
            + 3 * x_tile * 4                   # f32 elementwise temporaries (x, clamp, pow)
            + tb * ep * 4                      # emb accumulator scratch
            + 2 * tcp * ep * 2                 # double-buffered bf16 w_emb chunk
            + 2 * ep * ncp * 2                 # resident bf16 classifier weight (x2 safety)
            + 2 * tb * ncp * 4                 # double-buffered output tile
            + (2 << 20))                       # slack for small intermediates


def _choose_batch_tile(b, hw, tc, e, ncp, x_itemsize, n_x_buf, budget,
                       tb_max=256, prefer_two_steps=False):
    """Largest batch tile fitting the budget, preferring tiles that divide B (no pad)."""
    cands = {t for t in range(8, min(b, tb_max) + 1, 8) if b % t == 0}
    if b <= tb_max:
        cands.add(b)                  # full-batch tile is allowed even if B % 8 != 0
    if prefer_two_steps and b >= 16:
        # v7x-class parts: keep >= 2 batch steps so "parallel" splits across both TCs.
        halved = {t for t in cands if b // t >= 2}
        if halved:
            cands = halved
    for t in sorted(cands, reverse=True):
        if _vmem_estimate(t, hw, tc, e, ncp, x_itemsize, n_x_buf) <= budget:
            return t
    # Fallback: pad the batch (handled by the caller) and tile by a multiple of 8.
    for t in (128, 64, 32, 16, 8):
        if t <= tb_max and _vmem_estimate(t, hw, tc, e, ncp, x_itemsize, n_x_buf) <= budget:
            return t
    return 8


def _make_head_kernel(p, hw):
    """Build the fused head kernel; the GeM power is specialized at trace time."""
    p = float(p)
    inv_p = 1.0 / p
    inv_hw = 1.0 / float(hw)
    p_int = int(p) if (p.is_integer() and 1.0 <= p <= 8.0) else None

    def kernel(s_ref, x_ref, wemb_ref, bemb_ref, wcls_ref, out_ref, emb_acc):
        # s_ref    : (1,)          SMEM scalar (scale s)
        # x_ref    : (TB, HW, TC)  feature-map tile, channels lane-dense
        # wemb_ref : (TC, E)       bf16 embedding-weight chunk (streamed over C)
        # bemb_ref : (1, E)        f32 embedding bias (resident)
        # wcls_ref : (E, NCp)      bf16 row-normalized, transposed, lane-padded classifier
        # out_ref  : (TB, NCp)     f32 logits tile (written on the last C chunk)
        # emb_acc  : (TB, E)       f32 VMEM accumulator (persists across the C grid axis)
        c = pl.program_id(1)

        @pl.when(c == 0)
        def _init():
            emb_acc[...] = jnp.zeros_like(emb_acc)

        # ---- GeM on this channel chunk: clamp(eps) -> ^p -> spatial mean -> ^(1/p) ----
        x = x_ref[...].astype(jnp.float32)
        xc = jnp.maximum(x, GEM_EPS)
        if p_int is not None:
            xp = xc
            for _ in range(p_int - 1):          # p=3 -> two VPU multiplies; EUP stays free
                xp = xp * xc
        else:
            xp = jnp.exp(p * jnp.log(xc))       # generic x^p (x > 0 after clamp)
        pooled = jnp.sum(xp, axis=1) * inv_hw   # (TB, TC) spatial mean (sublane reduce)
        if p_int == 1:
            feat = pooled
        elif p_int == 2:
            feat = jnp.sqrt(pooled)
        else:
            # NOTE: lax.cbrt would save one EUP op at p=3 but has no guaranteed Mosaic
            # lowering; exp/log on the small pooled tensor is off the critical path.
            feat = jnp.exp(inv_p * jnp.log(pooled))

        # ---- Embedding: partial matmul over this C chunk, f32 accumulation ----
        emb_acc[...] += jnp.dot(feat.astype(wemb_ref.dtype), wemb_ref[...],
                                preferred_element_type=jnp.float32)

        # ---- Finalize on the last C chunk ----
        @pl.when(c == pl.num_programs(1) - 1)
        def _finalize():
            s = s_ref[0]
            emb = emb_acc[...] + bemb_ref[...].astype(jnp.float32)
            # F.normalize(emb, dim=1, eps=1e-12) fused with the s * emb scale.
            sumsq = jnp.sum(emb * emb, axis=1, keepdims=True)
            emb = emb * (s * lax.rsqrt(jnp.maximum(sumsq, NORM_EPS * NORM_EPS)))
            # Classifier: weight already row-normalized / transposed / lane-padded.
            out_ref[...] = jnp.dot(emb.astype(wcls_ref.dtype), wcls_ref[...],
                                   preferred_element_type=jnp.float32).astype(out_ref.dtype)

    return kernel


def fewshot_forward(x, p, s, w_emb, b_emb, w_cls, *, channels_last=False,
                    weight_dtype=jnp.bfloat16, tb_max=256):
    """Fused GeM -> Embedding -> L2-normalize -> scale -> normalized-weight classifier.

    x      : backbone feature map, (B, C, H, W) by default, (B, H, W, C) if channels_last.
    p      : Python float (GeM power).  s: scale parameter, shape (1,) or scalar.
    w_emb  : (E, C) nn.Linear weight.   b_emb: (E,).   w_cls: (NC, E).
    Returns (B, NC) float32 logits.
    """
    if channels_last:
        B, H, W, C = x.shape
        x_feat = x.reshape(B, H * W, C)
    else:
        B, C, H, W = x.shape
        # Lane-dense layout: channels on the last (lane) axis.  If the backbone emits
        # NHWC natively (the usual JAX conv layout), pass channels_last=True and this
        # wrapper transpose disappears.
        x_feat = jnp.transpose(x, (0, 2, 3, 1)).reshape(B, H * W, C)
    HW = H * W
    E = w_emb.shape[0]
    NC = w_cls.shape[0]
    NCp = _round_up(NC, 128)

    # ---- x-independent weight prep (hoisted out of the hot loop, plain JAX) ----
    w_emb_t = jnp.transpose(w_emb).astype(weight_dtype)                 # (C, E)
    b_emb_2d = b_emb.reshape(1, E).astype(jnp.float32)                  # (1, E)
    wc = w_cls.astype(jnp.float32)
    wc_n = wc / jnp.maximum(jnp.sqrt(jnp.sum(wc * wc, axis=1, keepdims=True)), NORM_EPS)
    w_cls_t = (jnp.zeros((E, NCp), jnp.float32)
               .at[:, :NC].set(wc_n.T)).astype(weight_dtype)            # (E, NCp) lane-padded
    s_arr = jnp.asarray(s, dtype=jnp.float32).reshape(1)

    # ---- generation-aware VMEM budget / megacore preference ----
    vmem_cap = _vmem_capacity_bytes()
    small_vmem = vmem_cap <= 96 * 1024 * 1024          # v7x-class part (64 MiB / TC)
    budget = (40 if small_vmem else 90) * 1024 * 1024
    vmem_limit = (48 if small_vmem else 100) * 1024 * 1024
    n_x_buf = 3 if _is_v5e() else 2

    # ---- tiling: batch axis streamed, channel axis chunked with an accumulator ----
    TC = _choose_c_chunk(C)
    TB = _choose_batch_tile(B, HW, TC, E, NCp, x_feat.dtype.itemsize, n_x_buf, budget,
                            tb_max=tb_max, prefer_two_steps=small_vmem)
    Bp = _round_up(B, TB)
    if Bp != B:                                         # fallback only; TB prefers divisors of B
        x_feat = jnp.pad(x_feat, ((0, Bp - B), (0, 0), (0, 0)))
    grid = (Bp // TB, C // TC)

    kernel = _make_head_kernel(p, HW)

    x_map = lambda i, c: (i, 0, c)
    if _is_v5e():
        # Deeper x pipelining keeps v5e's ~820 GB/s HBM stream saturated per-step.
        try:
            x_spec = pl.BlockSpec((TB, HW, TC), x_map, pipeline_mode=pl.Buffered(3))
        except TypeError:
            x_spec = pl.BlockSpec((TB, HW, TC), x_map)
    else:
        x_spec = pl.BlockSpec((TB, HW, TC), x_map)

    out = pl.pallas_call(
        kernel,
        grid=grid,
        out_shape=jax.ShapeDtypeStruct((Bp, NCp), jnp.float32),
        in_specs=[
            pl.BlockSpec(memory_space=pltpu.MemorySpace.SMEM),      # s (scalar)
            x_spec,                                                 # x tile (streamed B, chunked C)
            pl.BlockSpec((TC, E), lambda i, c: (c, 0)),             # w_emb_t chunk
            pl.BlockSpec((1, E), lambda i, c: (0, 0)),              # bias (resident)
            pl.BlockSpec((E, NCp), lambda i, c: (0, 0)),            # classifier weight (resident)
        ],
        out_specs=pl.BlockSpec((TB, NCp), lambda i, c: (i, 0)),
        scratch_shapes=[pltpu.VMEM((TB, E), jnp.float32)],          # embedding accumulator
        compiler_params=pltpu.CompilerParams(
            dimension_semantics=("parallel", "arbitrary"),
            vmem_limit_bytes=vmem_limit),
    )(s_arr, x_feat, w_emb_t, b_emb_2d, w_cls_t)

    return out[:B, :NC]


def fewshot_forward_ref(x, p, s, w_emb, b_emb, w_cls, *, channels_last=False):
    """Pure-JAX f32 reference mirroring the PyTorch forward."""
    if channels_last:
        x = jnp.transpose(x, (0, 3, 1, 2))
    xf = x.astype(jnp.float32)
    xc = jnp.maximum(xf, GEM_EPS)
    pooled = jnp.mean(xc ** p, axis=(2, 3)) ** (1.0 / p)                 # (B, C) GeM
    emb = pooled @ w_emb.astype(jnp.float32).T + b_emb.astype(jnp.float32)
    emb = emb / jnp.maximum(jnp.linalg.norm(emb, axis=1, keepdims=True), NORM_EPS)
    emb = jnp.asarray(s, jnp.float32).reshape(1, 1) * emb
    wc = w_cls.astype(jnp.float32)
    w_norm = wc / jnp.maximum(jnp.linalg.norm(wc, axis=1, keepdims=True), NORM_EPS)
    return emb @ w_norm.T


def fewshot_forward_ref_mixed(x, p, s, w_emb, b_emb, w_cls, *, channels_last=False):
    """Reference mirroring the kernel's bf16 matmul-input policy (f32 accumulation)."""
    if channels_last:
        x = jnp.transpose(x, (0, 3, 1, 2))
    xf = x.astype(jnp.float32)
    xc = jnp.maximum(xf, GEM_EPS)
    feat = jnp.mean(xc ** p, axis=(2, 3)) ** (1.0 / p)
    emb = jnp.dot(feat.astype(jnp.bfloat16), w_emb.T.astype(jnp.bfloat16),
                  preferred_element_type=jnp.float32) + b_emb.astype(jnp.float32)
    sumsq = jnp.sum(emb * emb, axis=1, keepdims=True)
    emb = emb * (jnp.asarray(s, jnp.float32).reshape(1, 1)
                 * lax.rsqrt(jnp.maximum(sumsq, NORM_EPS * NORM_EPS)))
    wc = w_cls.astype(jnp.float32)
    w_norm = wc / jnp.maximum(jnp.sqrt(jnp.sum(wc * wc, axis=1, keepdims=True)), NORM_EPS)
    return jnp.dot(emb.astype(jnp.bfloat16), w_norm.T.astype(jnp.bfloat16),
                   preferred_element_type=jnp.float32)


if __name__ == "__main__":
    # Small synthetic shapes consistent with the module's head
    # (real se_resnext50: C=2048, HW=49, E=2048, NC=100 -- scaled down here).
    B, C, H, W = 16, 512, 4, 4       # backbone feature map (n_features = 512 here)
    E, NC = 256, 100                 # n_embedding, num_classes

    key = jax.random.PRNGKey(0)
    k_x, k_we, k_be, k_wc = jax.random.split(key, 4)

    # Backbone feature map stand-in (NCHW), fed as bf16 (halves the dominant HBM stream).
    x = jax.random.uniform(k_x, (B, C, H, W), dtype=jnp.float32)
    x_bf16 = x.astype(jnp.bfloat16)

    # Deterministic parameter init (shapes from __init__).
    p = 3.0                                             # GeM p (static -> specialized)
    s = jnp.array([10.0], dtype=jnp.float32)            # scale parameter
    emb_bound = 1.0 / float(C) ** 0.5                   # nn.Linear default init range
    w_emb = jax.random.uniform(k_we, (E, C), minval=-emb_bound, maxval=emb_bound,
                               dtype=jnp.float32)
    b_emb = jax.random.uniform(k_be, (E,), minval=-emb_bound, maxval=emb_bound,
                               dtype=jnp.float32)
    cls_bound = (6.0 / (E + NC)) ** 0.5                 # xavier_uniform_
    w_cls = jax.random.uniform(k_wc, (NC, E), minval=-cls_bound, maxval=cls_bound,
                               dtype=jnp.float32)

    out = fewshot_forward(x_bf16, p, s, w_emb, b_emb, w_cls)
    out = jax.block_until_ready(out)
    assert out.shape == (B, NC)
    assert bool(jnp.all(jnp.isfinite(out)))

    # Structural check vs a reference that mirrors the kernel's mixed-precision policy.
    ref_mixed = fewshot_forward_ref_mixed(x_bf16, p, s, w_emb, b_emb, w_cls)
    assert jnp.allclose(out, ref_mixed, rtol=2e-3, atol=2e-3), "mismatch vs mixed-precision reference"

    # End-to-end check vs the f32 PyTorch-equivalent forward (headroom for bf16 weights).
    ref_f32 = fewshot_forward_ref(x_bf16, p, s, w_emb, b_emb, w_cls)
    assert jnp.allclose(out, ref_f32, rtol=5e-2, atol=5e-2), "mismatch vs f32 reference"

    print("KERNEL_OK")
</pallas_src>

<mosaic_0001>
module attributes {stable_mosaic.version = 11 : i64} {
  func.func @kernel(%arg0: i32, %arg1: i32, %arg2: memref<1xf32, #tpu.memory_space<smem>>, %arg3: memref<8x16x256xbf16, #tpu.memory_space<vmem>>, %arg4: memref<256x256xbf16, #tpu.memory_space<vmem>>, %arg5: memref<1x256xf32, #tpu.memory_space<vmem>>, %arg6: memref<256x128xbf16, #tpu.memory_space<vmem>>, %arg7: memref<8x128xf32, #tpu.memory_space<vmem>>, %arg8: memref<8x256xf32, #tpu.memory_space<vmem>>) attributes {dimension_semantics = [#tpu.dimension_semantics<parallel>, #tpu.dimension_semantics<arbitrary>], iteration_bounds = array<i64: 2, 2>, scalar_prefetch = 0 : i64, scratch_operands = 1 : i64, tpu.core_type = #tpu.core_type<tc>, window_params = [{transform_indices = @transform_0, window_bounds = array<i64: 1>}, {transform_indices = @transform_1, window_bounds = array<i64: 8, 16, 256>}, {transform_indices = @transform_2, window_bounds = array<i64: 256, 256>}, {pipeline_mode = #tpu.pipeline_mode<synchronous>, transform_indices = @transform_3, window_bounds = array<i64: 1, 256>}, {pipeline_mode = #tpu.pipeline_mode<synchronous>, transform_indices = @transform_4, window_bounds = array<i64: 256, 128>}, {transform_indices = @transform_5, window_bounds = array<i64: 8, 128>}]} {
    %c0_i32 = arith.constant 0 : i32
    %0 = arith.cmpi eq, %arg1, %c0_i32 : i32
    %1 = arith.extui %0 : i1 to i32
    %c0_i32_0 = arith.constant 0 : i32
    %2 = arith.cmpi ne, %1, %c0_i32_0 : i32
    scf.if %2 {
      %cst_14 = arith.constant 0.000000e+00 : f32
      %25 = vector.broadcast %cst_14 : f32 to vector<8x256xf32>
      %c0_15 = arith.constant 0 : index
      %c0_16 = arith.constant 0 : index
      %26 = vector.load %arg8[%c0_15, %c0_16] : memref<8x256xf32, #tpu.memory_space<vmem>>, vector<8x256xf32>
      tpu.vector_store %arg8[%c0_15, %c0_16], %25 {strides = array<i32>} : memref<8x256xf32, #tpu.memory_space<vmem>>, vector<8x256xf32>,
    } else {
    }
    %c0 = arith.constant 0 : index
    %c0_1 = arith.constant 0 : index
    %c0_2 = arith.constant 0 : index
    %3 = vector.load %arg3[%c0, %c0_1, %c0_2] : memref<8x16x256xbf16, #tpu.memory_space<vmem>>, vector<8x16x256xbf16>
    %4 = arith.extf %3 : vector<8x16x256xbf16> to vector<8x16x256xf32>
    %cst = arith.constant 9.99999997E-7 : f32
    %5 = vector.broadcast %cst : f32 to vector<8x16x256xf32>
    %6 = arith.maximumf %4, %5 : vector<8x16x256xf32>
    %7 = arith.mulf %6, %6 : vector<8x16x256xf32>
    %8 = arith.mulf %7, %6 : vector<8x16x256xf32>
    %cst_3 = arith.constant dense<0.000000e+00> : vector<8x256xf32>
    %9 = vector.multi_reduction <add>, %8, %cst_3 [1] : vector<8x16x256xf32> to vector<8x256xf32>
    %cst_4 = arith.constant 6.250000e-02 : f32
    %10 = vector.broadcast %cst_4 : f32 to vector<8x256xf32>
    %11 = arith.mulf %9, %10 : vector<8x256xf32>
    %12 = math.log %11 : vector<8x256xf32>
    %cst_5 = arith.constant 0.333333343 : f32
    %13 = vector.broadcast %cst_5 : f32 to vector<8x256xf32>
    %14 = arith.mulf %13, %12 : vector<8x256xf32>
    %15 = math.exp %14 : vector<8x256xf32>
    %c0_6 = arith.constant 0 : index
    %c0_7 = arith.constant 0 : index
    %16 = vector.load %arg8[%c0_6, %c0_7] : memref<8x256xf32, #tpu.memory_space<vmem>>, vector<8x256xf32>
    %17 = arith.truncf %15 : vector<8x256xf32> to vector<8x256xbf16>
    %c0_8 = arith.constant 0 : index
    %c0_9 = arith.constant 0 : index
    %18 = vector.load %arg4[%c0_8, %c0_9] : memref<256x256xbf16, #tpu.memory_space<vmem>>, vector<256x256xbf16>
    %cst_10 = arith.constant dense<0.000000e+00> : vector<8x256xf32>
    %19 = tpu.matmul %17, %18, %cst_10 {dimension_numbers = #tpu.dot_dimension_numbers<[1], [0], [0], [1], [0, 0, 1, 1], [], []>} : vector<8x256xbf16>, vector<256x256xbf16>, vector<8x256xf32> -> vector<8x256xf32>
    %20 = arith.addf %16, %19 : vector<8x256xf32>
    %c0_11 = arith.constant 0 : index
    %c0_12 = arith.constant 0 : index
    %21 = vector.load %arg8[%c0_11, %c0_12] : memref<8x256xf32, #tpu.memory_space<vmem>>, vector<8x256xf32>
    tpu.vector_store %arg8[%c0_11, %c0_12], %20 {strides = array<i32>} : memref<8x256xf32, #tpu.memory_space<vmem>>, vector<8x256xf32>,
    %c1_i32 = arith.constant 1 : i32
    %22 = arith.cmpi eq, %arg1, %c1_i32 : i32
    %23 = arith.extui %22 : i1 to i32
    %c0_i32_13 = arith.constant 0 : i32
    %24 = arith.cmpi ne, %23, %c0_i32_13 : i32
    scf.if %24 {
      %c0_14 = arith.constant 0 : index
      %25 = memref.load %arg2[%c0_14] : memref<1xf32, #tpu.memory_space<smem>>
      %c0_15 = arith.constant 0 : index
      %c0_16 = arith.constant 0 : index
      %26 = vector.load %arg8[%c0_15, %c0_16] : memref<8x256xf32, #tpu.memory_space<vmem>>, vector<8x256xf32>
      %c0_17 = arith.constant 0 : index
      %c0_18 = arith.constant 0 : index
      %27 = vector.load %arg5[%c0_17, %c0_18] : memref<1x256xf32, #tpu.memory_space<vmem>>, vector<1x256xf32>
      %28 = vector.broadcast %27 : vector<1x256xf32> to vector<8x256xf32>
      %29 = arith.addf %26, %28 : vector<8x256xf32>
      %30 = arith.mulf %29, %29 : vector<8x256xf32>
      %cst_19 = arith.constant dense<0.000000e+00> : vector<8xf32>
      %31 = vector.multi_reduction <add>, %30, %cst_19 [1] : vector<8x256xf32> to vector<8xf32>
      %32 = vector.shape_cast %31 : vector<8xf32> to vector<8x1xf32>
      %cst_20 = arith.constant 1.000000e-24 : f32
      %33 = vector.broadcast %cst_20 : f32 to vector<8x1xf32>
      %34 = arith.maximumf %32, %33 : vector<8x1xf32>
      %35 = math.rsqrt %34 : vector<8x1xf32>
      %36 = vector.broadcast %25 : f32 to vector<8x1xf32>
      %37 = arith.mulf %36, %35 : vector<8x1xf32>
      %38 = vector.broadcast %37 : vector<8x1xf32> to vector<8x256xf32>
      %39 = arith.mulf %29, %38 : vector<8x256xf32>
      %40 = arith.truncf %39 : vector<8x256xf32> to vector<8x256xbf16>
      %c0_21 = arith.constant 0 : index
      %c0_22 = arith.constant 0 : index
      %41 = vector.load %arg6[%c0_21, %c0_22] : memref<256x128xbf16, #tpu.memory_space<vmem>>, vector<256x128xbf16>
      %cst_23 = arith.constant dense<0.000000e+00> : vector<8x128xf32>
      %42 = tpu.matmul %40, %41, %cst_23 {dimension_numbers = #tpu.dot_dimension_numbers<[1], [0], [0], [1], [0, 0, 1, 1], [], []>} : vector<8x256xbf16>, vector<256x128xbf16>, vector<8x128xf32> -> vector<8x128xf32>
      %c0_24 = arith.constant 0 : index
      %c0_25 = arith.constant 0 : index
      %43 = vector.load %arg7[%c0_24, %c0_25] : memref<8x128xf32, #tpu.memory_space<vmem>>, vector<8x128xf32>
      tpu.vector_store %arg7[%c0_24, %c0_25], %42 {strides = array<i32>} : memref<8x128xf32, #tpu.memory_space<vmem>>, vector<8x128xf32>,
    } else {
    }
    return
  }
  func.func @transform_0(%arg0: i32, %arg1: i32) -> i32 {
    %c0_i32 = arith.constant 0 : i32
    %c0_i32_0 = arith.constant 0 : i32
    return %c0_i32 : i32
  }
  func.func @transform_1(%arg0: i32, %arg1: i32) -> (i32, i32, i32) {
    %c0_i32 = arith.constant 0 : i32
    %c0_i32_0 = arith.constant 0 : i32
    return %arg0, %c0_i32, %arg1 : i32, i32, i32
  }
  func.func @transform_2(%arg0: i32, %arg1: i32) -> (i32, i32) {
    %c0_i32 = arith.constant 0 : i32
    %c0_i32_0 = arith.constant 0 : i32
    return %arg1, %c0_i32 : i32, i32
  }
  func.func @transform_3(%arg0: i32, %arg1: i32) -> (i32, i32) {
    %c0_i32 = arith.constant 0 : i32
    %c0_i32_0 = arith.constant 0 : i32
    %c0_i32_1 = arith.constant 0 : i32
    return %c0_i32, %c0_i32_0 : i32, i32
  }
  func.func @transform_4(%arg0: i32, %arg1: i32) -> (i32, i32) {
    %c0_i32 = arith.constant 0 : i32
    %c0_i32_0 = arith.constant 0 : i32
    %c0_i32_1 = arith.constant 0 : i32
    return %c0_i32, %c0_i32_0 : i32, i32
  }
  func.func @transform_5(%arg0: i32, %arg1: i32) -> (i32, i32) {
    %c0_i32 = arith.constant 0 : i32
    %c0_i32_0 = arith.constant 0 : i32
    return %arg0, %c0_i32 : i32, i32
  }
}

</mosaic_0001>

<bundles_post_ra>
// kernel: tpu_custom_call.1
= control target key start
LH: loop header
LB: loop body
LE: loop exit
PB: predicated region body
PF: predicated region fallthrough
CT: control target
= control target key end

     0   :  { %s2577_s0 = inlined_call_operand.<no memory space> [shape: f32[1], index: 0, kind: input, shape index: {}]   ;;  %s2578_s1 = inlined_call_operand.hbm [shape: bf16[16,16,512], index: 1, kind: input, shape index: {}]   ;;  %s2579_s2 = inlined_call_operand.hbm [shape: bf16[512,256], index: 2, kind: input, shape index: {}]   ;;  %s2580_s3 = inlined_call_operand.vmem [shape: f32[1,256], index: 3, kind: input, shape index: {}]   ;;  %s2581_s4 = inlined_call_operand.hbm [shape: bf16[256,128], index: 4, kind: input, shape index: {}]   ;;  %s2582_s5 = inlined_call_operand.hbm [shape: f32[16,128], index: 5, kind: output, shape index: {}]  }
   0x1   :  { %2605 = sst [smem:[#allocation27_spill]] %s2580_s3 }
   0x2   :  { %2606 = sst [smem:[#allocation28_spill]] %s2581_s4 }
   0x3   :  { %2607 = sst [smem:[#allocation29_spill]] %s2582_s5 }
   0x4   :  { %10 = sst [smem:[#allocation3]] %s2577_s0 }
   0x5   :  { %11 = vsyncpa [#allocation5], 0 }
   0x6   :  { %13 = vsyncpa [#allocation5 + $0x1], 0 }
   0x7   :  { %14 = vsyncpa [#allocation8], 0 }
   0x8   :  { %16 = vsyncpa [#allocation8 + $0x1], 0 }
   0x9   :  { %17 = vsyncpa [#allocation6], 0 }
   0xa   :  { %19 = vsyncpa [#allocation6 + $0x1], 0  ;;  %s1986_s20 = smov 0   ;;  %s1988_s21 = smov 0  }
   0xb   :  { %s1990_s22 = smov 0   ;;  %s1992_s23 = smov 0  }
   0xc   :  { %s1994_s24 = smov 0   ;;  %s1996_s25 = smov 0  }
   0xd   :  { %s1998_s26 = smov 0   ;;  %s2000_s0 = smov 0  }
   0xe   :  { %s2002_s27 = smov 0   ;;  %s2004_s28 = smov 0  }
   0xf   :  { %s2006_s29 = smov 0   ;;  %s2008_s30 = smov 0  }
  0x10   :  { %s2010_s6 = smov 0   ;;  %s2012_s7 = smov 0  }
  0x11 LB: > { %2608 = sst [smem:[#allocation15_spill]] %s1889_s20  ;;  %s2053_s8 = sadd.s32 4294967295, %s1941_s7   ;;  %s1941_s7 = sphi %s2012_s7, %s25_s7   ;;  %s1937_s6 = sphi %s2010_s6, %s2672_s6   ;;  %s1933_s30 = sphi %s2008_s30, %s2671_s30   ;;  %s1929_s29 = sphi %s2006_s29, %s2670_s29   ;;  %s1925_s28 = sphi %s2004_s28, %s2669_s28   ;;  %s1921_s27 = sphi %s2002_s27, %s2668_s27   ;;  %s1917_s0 = sphi %s2000_s0, %s2667_s0   ;;  %s1913_s26 = sphi %s1998_s26, %s2666_s26   ;;  %s1909_s25 = sphi %s1996_s25, %s2665_s25   ;;  %s1905_s24 = sphi %s1994_s24, %s2664_s24   ;;  %s1901_s23 = sphi %s1992_s23, %s2663_s23   ;;  %s1897_s22 = sphi %s1990_s22, %s2662_s22   ;;  %s1893_s21 = sphi %s1988_s21, %s2661_s21   ;;  %s1889_s20 = sphi %s1986_s20, %s2660_s20  }
  0x12   : > { %2609 = sst [smem:[#allocation16_spill]] %s1893_s21  ;;  %s1324_s9 = sadd.s32 4294967294, %s1941_s7  }
  0x13   : > { %2610 = sst [smem:[#allocation17_spill]] %s1925_s28  ;;  %p80_p0 = scmp.ne.s32.totalorder %s1917_s0, %s1913_s26 }
  0x14   : > { %2611 = sst [smem:[#allocation18_spill]] %s1929_s29  ;;  %p2585_p1 = scmp.eq.s32.totalorder %s2053_s8, 0 }
  0x15   : > { %2612 = sst [smem:[#allocation19_spill]] %s2053_s8  ;;  %p106_p2 = scmp.ne.s32.totalorder %s1905_s24, %s1901_s23 }
  0x16   : > { %p2062_p3 = por %p2585_p1, %p80_p0  ;;  %p171_p4 = scmp.ne.s32.totalorder %s1897_s22, %s1893_s21 }
  0x17   : > { %p2070_p5 = por %p106_p2, %p2585_p1  ;;  %p172_p6 = scmp.eq.s32.totalorder %s2053_s8, 3 }
  0x18   : > { %s2613_s11 = scalar_select %p2062_p3, 1, 0 }
  0x19   : > { %s2614_s12 = scalar_select %p2070_p5, 1, 0 }
  0x1a   : > { %p177_p7 = scmp.ne.s32.totalorder %s1893_s21, %s1889_s20  ;;  %p178_p8 = scmp.eq.s32.totalorder %s1324_s9, 3 }
  0x1b   : > { %2615 = sst [smem:[#allocation20_spill]] %s2614_s12  ;;  %p2077_p9 = por %p172_p6, %p171_p4 }
  0x1c   : > { %p1325_p10 = scmp.ge.s32.totalorder %s1941_s7, 1  ;;  %p2082_p11 = por %p178_p8, %p177_p7 }
  0x1d   : > { %s2616_s13 = scalar_select %p2077_p9, 1, 0 }
  0x1e   : > { %s2618_s14 = scalar_select %p2082_p11, 1, 0 }
  0x1f   : > { %2617 = sst [smem:[#allocation21_spill]] %s2616_s13  ;;  %p185_p12 = scmp.lt.s32.totalorder %s1941_s7, 5 }
  0x20   : > { %2619 = sst [smem:[#allocation22_spill]] %s2618_s14  ;;  %s1943_s16 = smov [#allocation9]  }
  0x21   : > { %p2087_p13 = pnand %p1325_p10, %p185_p12  ;;  %s203_s17 = sshll.u32 %s1943_s16, 4  ;;  %s204_s17 = int_to_ptr.vmem [resolvable:$true] %s203_s17 }
  0x22   : > { %s2622_s4 = sld [smem:[#allocation28_spill]] }
  0x23   : > { %s2620_s15 = scalar_select %p2087_p13, 1, 0 }
  0x24   : > { %p1431_p0 = pneg %p2087_p13 }
  0x26   : > { %p2095_p2 = pnand %p1431_p0, %p2585_p1 }
  0x28   : > { %s1699_s26 = scalar_lea.hbm %s2622_s4, 2048  ;;  %p1701_p6 = pneg %p2095_p2 }
  0x29   : > { %p1700_p4 = scmp.ne.s32.totalorder %s2622_s4, %s1699_s26  ;;  %p1706_p10 = scmp.lt.u32.totalorder %s1699_s26, %s2622_s4 }
  0x2b   : > { %p1702_p7 = pnand %p1701_p6, %p1700_p4 }
  0x2d   : > { %p1703_p8 = pneg %p1702_p7 }
  0x2f   : > { %p1708_p12 = pnand %p1706_p10, %p1703_p8 }
  0x31   : > { %1711 = shalt.err (!%p1708_p12)
}
  0x32   : > { %s1712_s20 = scalar_lea.vmem %s204_s17, 2048  ;;  %p1720_p9 = scmp.lt.s32.totalorder %s204_s17, %s204_s17 }
  0x33   : > { %p1713_p0 = scmp.ne.s32.totalorder %s204_s17, %s1712_s20  ;;  %p1721_p5 = scmp.lt.s32.totalorder %s1712_s20, %s1712_s20 }
  0x35   : > { %p1715_p1 = pnand %p1713_p0, %p1701_p6  ;;  %p1722_p3 = por %p1721_p5, %p1720_p9 }
  0x37   : > { %p1716_p11 = pneg %p1715_p1 }
  0x39   : > { %p1723_p13 = pnand %p1722_p3, %p1716_p11 }
  0x3b   : > { %1726 = shalt.err (!%p1723_p13)
}
  0x3c   : > { %s1944_s10 = smov 64   ;;  %s1945_s14 = smov 4  }
  0x3d   : > { %1434 = dma.hbm_to_vmem [thread:$0]  (!%p2095_p2), %s2622_s4, 2048, %s204_s17, [#allocation8], %s1944_s10, %s1944_s10, %s1945_s14  }
  0x3e   : > { %s34_s20 = sadd.s32 1, %s1933_s30  ;;  %s37_s26 = sadd.s32 1, %s1937_s6 }
  0x3f   : > { %p35_p1 = scmp.ge.s32.totalorder %s34_s20, 2  ;;  %s67_s9 = sadd.s32 1, %s1921_s27 }
  0x40   : > { %p74_p3 = scmp.ne.s32.totalorder %s1921_s27, %s1917_s0  ;;  %p2602_p5 = scmp.eq.s32.totalorder %s1941_s7, 0 }
  0x41   : > { %s2674_s20 = smov (%p35_p1, %s34_s20), 0  ;;  %s2676_s26 = smov (!%p35_p1, %s37_s26), %s1937_s6 }
  0x42   : > { %2623 = sst [smem:[#allocation23_spill]] %s2674_s20  ;;  %s2125_s18 = ssub.s32 %s1933_s30, %s2674_s20 }
  0x43   : > { %p39_p9 = scmp.ge.s32.totalorder %s2676_s26, 2  ;;  %p91_p11 = scmp.eq.s32.totalorder %s2125_s18, 0 }
  0x44   : > { %p2131_p13 = por %p2602_p5, %p74_p3  ;;  %p2601_p2 = scmp.lt.s32.totalorder %s1941_s7, 4 }
  0x45   : > { %s2678_s26 = smov (%p39_p9, %s2676_s26), 0  ;;  %s217_s16 = sand.u32 1, %s1921_s27  }
  0x46   : > { %2625 = sst [smem:[#allocation24_spill]] %s2678_s26  ;;  %s1330_s10 = sshll.u32 %s1933_s30, 1 }
  0x47   : > { %s62_s14 = ssub.s32 %s1937_s6, %s2678_s26  ;;  %s1328_s23 = sshll.u32 %s217_s16, 7 }
  0x48   : > { %s64_s19 = sor.u32 %s2125_s18, %s62_s14  ;;  %p159_p4 = scmp.eq.s32.totalorder %s62_s14, 0 }
  0x49   : > { %p65_p6 = scmp.eq.s32.totalorder %s64_s19, 0  ;;  %s2626_s4 = sadd.s32 1, %s1897_s22 }
  0x4a   : > { %s2146_s20 = scalar_select %p159_p4, %s1897_s22, %s2626_s4  }
  0x4b   : > { %s2149_s5 = scalar_select %p65_p6, %s1921_s27, %s67_s9  }
  0x4c   : > { %s1396_s13 = sshll.u32 %s1937_s6, 6  ;;  %s221_s3 = scalar_lea.vmem [#allocation4], %s1328_s23 }
  0x4d   : > { %s228_s29 = sadd.s32 %s1396_s13, %s1330_s10  ;;  %s231_s28 = sshll.u32 %s221_s3, 4  ;;  %s2152_s28 = int_to_ptr.vmem [resolvable:$true] %s231_s28 }
  0x4e   : > { %s1332_s21 = sshll.u32 %s228_s29, 6  ;;  %p2163_p7 = pnand %p2601_p2, %p2131_p13 }
  0x4f   : > { %s2157_s26 = scalar_lea.hbm %s2578_s1, %s1332_s21  ;;  %s2167_s3 = scalar_lea.sflag [#allocation5], %s217_s16 }
  0x50   : > { %s1727_s29 = scalar_lea.hbm %s2157_s26, 2048  ;;  %p1729_p10 = pneg %p2163_p7 }
  0x51   : > { %p1728_p8 = scmp.ne.s32.totalorder %s2157_s26, %s1727_s29  ;;  %s1732_s12 = scalar_lea.hbm %s2578_s1, 8192 }
  0x52   : > { %p1733_p1 = scmp.lt.u32.totalorder %s2157_s26, %s2578_s1  ;;  %p1734_p3 = scmp.lt.u32.totalorder %s1732_s12, %s1727_s29 }
  0x53   : > { %p1730_p12 = pnand %p1729_p10, %p1728_p8  ;;  %p1736_p13 = scmp.lt.u32.totalorder %s1727_s29, %s2157_s26 }
  0x54   : > { %p1735_p9 = por %p1734_p3, %p1733_p1 }
  0x55   : > { %p1731_p0 = pneg %p1730_p12 }
  0x56   : > { %p1737_p4 = por %p1736_p13, %p1735_p9 }
  0x58   : > { %p1738_p6 = pnand %p1737_p4, %p1731_p0 }
  0x5a   : > { %1741 = shalt.err (!%p1738_p6)
}
  0x5b   : > { %s1742_s17 = scalar_lea.vmem %s2152_s28, 2048  ;;  %s1946_s16 = smov [#allocation4]  }
  0x5c   : > { %p1743_p8 = scmp.ne.s32.totalorder %s2152_s28, %s1742_s17  ;;  %s1747_s10 = sshll.u32 %s1946_s16, 4  ;;  %s1748_s10 = int_to_ptr.vmem [resolvable:$false] %s1747_s10 }
  0x5d   : > { %s1749_s14 = scalar_lea.vmem %s1748_s10, 4096  ;;  %p1750_p5 = scmp.lt.s32.totalorder %s2152_s28, %s1748_s10 }
  0x5e   : > { %p1745_p12 = pnand %p1743_p8, %p1729_p10  ;;  %p1751_p1 = scmp.lt.s32.totalorder %s1749_s14, %s1742_s17 }
  0x60   : > { %p1746_p2 = pneg %p1745_p12  ;;  %p1752_p3 = por %p1751_p1, %p1750_p5 }
  0x62   : > { %p1753_p9 = pnand %p1752_p3, %p1746_p2 }
  0x64   : > { %1756 = shalt.err (!%p1753_p9)
}
  0x65   : > { %s1947_s19 = smov 256   ;;  %s1948_s23 = smov 128  }
  0x66   : > { %s1949_s29 = smov 8   ;;  %s241_s21 = sand.u32 1, %s1941_s7  }
  0x67   : > { %1438 = dma.hbm_to_vmem [thread:$0]  (!%p2163_p7), %s2157_s26, 2048, %s2152_s28, %s2167_s3, %s1947_s19, %s1948_s23, %s1949_s29  }
  0x68   : > { %s93_s8 = sadd.s32 1, %s1909_s25  ;;  %p100_p5 = scmp.ne.s32.totalorder %s1909_s25, %s1905_s24 }
  0x69   : > { %s2204_s12 = scalar_select %p91_p11, %s1909_s25, %s93_s8  }
  0x6a   : > { %p2628_p2 = scmp.eq.s32.totalorder %s1941_s7, 0  ;;  %s243_s13 = sand.u32 1, %s1909_s25  }
  0x6b   : > { %s1333_s9 = sshll.u32 %s243_s13, 8  ;;  %s1398_s17 = sshll.u32 %s1933_s30, 12 }
  0x6c   : > { %p102_p10 = por %p100_p5, %p2628_p2  ;;  %s2213_s14 = scalar_lea.hbm %s2579_s2, %s1398_s17 }
  0x6d   : > { %s245_s28 = scalar_lea.vmem [#allocation7], %s1333_s9  ;;  %p2629_p7 = scmp.lt.s32.totalorder %s1941_s7, 4 }
  0x6e   : > { %s253_s26 = sshll.u32 %s245_s28, 4  ;;  %s2223_s4 = scalar_lea.sflag [#allocation8], %s241_s21  ;;  %s2221_s26 = int_to_ptr.vmem [resolvable:$true] %s253_s26 }
  0x6f   : > { %p2217_p0 = pnand %p2629_p7, %p102_p10  ;;  %s1757_s3 = scalar_lea.hbm %s2213_s14, 4096 }
  0x70   : > { %p1758_p11 = scmp.ne.s32.totalorder %s2213_s14, %s1757_s3  ;;  %s1762_s13 = scalar_lea.hbm %s2579_s2, 8192 }
  0x71   : > { %p1759_p13 = pneg %p2217_p0  ;;  %p1763_p8 = scmp.lt.u32.totalorder %s2213_s14, %s2579_s2 }
  0x72   : > { %p1764_p12 = scmp.lt.u32.totalorder %s1762_s13, %s1757_s3  ;;  %p1766_p3 = scmp.lt.u32.totalorder %s1757_s3, %s2213_s14 }
  0x73   : > { %p1760_p4 = pnand %p1759_p13, %p1758_p11 }
  0x74   : > { %p1765_p1 = por %p1764_p12, %p1763_p8 }
  0x75   : > { %p1761_p6 = pneg %p1760_p4 }
  0x76   : > { %p1767_p9 = por %p1766_p3, %p1765_p1 }
  0x78   : > { %p1768_p5 = pnand %p1767_p9, %p1761_p6 }
  0x7a   : > { %1771 = shalt.err (!%p1768_p5)
}
  0x7b   : > { %s1772_s21 = scalar_lea.vmem %s2221_s26, 4096  ;;  %s1950_s16 = smov [#allocation7]  }
  0x7c   : > { %p1773_p2 = scmp.ne.s32.totalorder %s2221_s26, %s1772_s21  ;;  %s1777_s10 = sshll.u32 %s1950_s16, 4  ;;  %s1778_s10 = int_to_ptr.vmem [resolvable:$false] %s1777_s10 }
  0x7d   : > { %s1779_s28 = scalar_lea.vmem %s1778_s10, 8192  ;;  %p1780_p11 = scmp.lt.s32.totalorder %s2221_s26, %s1778_s10 }
  0x7e   : > { %p1775_p10 = pnand %p1773_p2, %p1759_p13  ;;  %p1781_p4 = scmp.lt.s32.totalorder %s1779_s28, %s1772_s21 }
  0x80   : > { %p1776_p7 = pneg %p1775_p10  ;;  %p1782_p8 = por %p1781_p4, %p1780_p11 }
  0x82   : > { %p1783_p12 = pnand %p1782_p8, %p1776_p7 }
  0x84   : > { %1786 = shalt.err (!%p1783_p12)
}
  0x85   : > { %1441 = dma.hbm_to_vmem [thread:$0]  (!%p2217_p0), %s2213_s14, 4096, %s2221_s26, %s2223_s4, %s1948_s23, %s1948_s23, %s1949_s29  }
  0x86   : > { %p2631_p13 = scmp.ne.s32.totalorder %s2620_s15, 0 }
  0x88   : > { %265 = sbr.rel (%p2631_p13) target bundleno = 940 (0x3ac), region = 40 }
  0x8f   : > { %s267_s3 = sand.u32 1, %s1917_s0   ;;  %p2632_p6 = scmp.ne.s32.totalorder %s2613_s11, 0 }
  0x90   : > { %s1338_s19 = sshll.u32 %s267_s3, 7  ;;  %s268_s8 = scalar_lea.sflag [#allocation5], %s267_s3 }
  0x91   : > { %s2257_s13 = scalar_lea.vmem [#allocation4], %s1338_s19 }
  0x92   : > { %1872 = dma.done.wait (%p2632_p6), %s268_s8, 2048  }
  0x93   : > { %1874 = vsyncadd (%p2632_p6), %s268_s8, 4294965248  ;;  %s2633_s18 = sld [smem:[#allocation19_spill]]  ;;  %s2634_s9 = sld [smem:[#allocation20_spill]] }
  0x94   : > { %s278_s23 = sand.u32 1, %s1905_s24  }
  0x95   : > { %s1339_s29 = sshll.u32 %s278_s23, 8 }
  0x96   : > { %s2265_s14 = scalar_lea.vmem [#allocation7], %s1339_s29 }
  0x99   : > { %s276_s17 = sand.u32 1, %s2633_s18   ;;  %p2635_p0 = scmp.ne.s32.totalorder %s2634_s9, 0 }
  0x9a   : > { %s277_s15 = scalar_lea.sflag [#allocation8], %s276_s17 }
  0x9b   : > { %1876 = dma.done.wait (%p2635_p0), %s277_s15, 4096  }
  0x9c   : > { %1878 = vsyncadd (%p2635_p0), %s277_s15, 4294963200  ;;  %p2636_p1 = scmp.eq.s32.totalorder %s2633_s18, 0 }
  0x9e   : > { %1880 = dma.done.wait (%p2636_p1), [#allocation8], 2048   ;;  %p2637_p3 = pmov %p2636_p1 }
  0x9f   : > { %s2638_s11 = sld [smem:[#allocation16_spill]]  ;;  %s2639_s16 = sld [smem:[#allocation17_spill]] }
  0xa0   : > { %1882 = vsyncadd (%p2637_p3), [#allocation8], 4294965248 }
  0xa5   : > { %s313_s26 = sand.u32 1, %s2638_s11   ;;  %p1342_p9 = scmp.ne.s32.totalorder %s2639_s16, 0 }
  0xa6   : > { %s2278_s4 = sshll.u32 %s313_s26, 3  ;;  %v1951_v0 = vmov (!%p1342_p9), 0.0  }
  0xa7   : > { %s315_s21 = scalar_lea.vmem [#allocation10], %s2278_s4  ;;  %323 = sbr.rel (%p1342_p9) target bundleno = 174 (0xae), region = 56  ;;  %324 = vst [vmem:[#allocation2] sm:$0xff] (!%p1342_p9), %v1951_v0  ;;  %325 = vst [vmem:[#allocation2 + $0x8] sm:$0xff] (!%p1342_p9), %v1951_v0 }
  0xae PF: > { %v1569_v1 = vld [vmem:[%s2265_s14 + $0x4] ss:$8 sps:$4 sm:$0xff]   ;;  %v1571_v2 = vld [vmem:[%s2265_s14] ss:$8 sps:$4 sm:$0xff]   ;;  %v1572_v3 = vld [vmem:[%s2265_s14 + $0x14] ss:$8 sps:$4 sm:$0xff]  }
  0xaf   : > { %945 = vmatprep.subr.bf16.mxu0 %v1569_v1  ;;  %v1574_v4 = vld [vmem:[%s2265_s14 + $0x10] ss:$8 sps:$4 sm:$0xff]   ;;  %v1575_v5 = vld [vmem:[%s2265_s14 + $0x24] ss:$8 sps:$4 sm:$0xff]   ;;  %v1577_v6 = vld [vmem:[%s2265_s14 + $0x20] ss:$8 sps:$4 sm:$0xff]  }
  0xb0   : > { %946 = vmatpush1.bf16.msra.mxu0 %v1571_v2  ;;  %v1578_v7 = vld [vmem:[%s2265_s14 + $0x34] ss:$8 sps:$4 sm:$0xff]   ;;  %v1580_v8 = vld [vmem:[%s2265_s14 + $0x30] ss:$8 sps:$4 sm:$0xff]   ;;  %v1581_v9 = vld [vmem:[%s2265_s14 + $0x44] ss:$8 sps:$4 sm:$0xff]  }
  0xb1   : > { %947 = vmatprep.subr.bf16.mxu0 %v1572_v3  ;;  %v1583_v10 = vld [vmem:[%s2265_s14 + $0x40] ss:$8 sps:$4 sm:$0xff]   ;;  %v1584_v11 = vld [vmem:[%s2265_s14 + $0x54] ss:$8 sps:$4 sm:$0xff]   ;;  %v1586_v12 = vld [vmem:[%s2265_s14 + $0x50] ss:$8 sps:$4 sm:$0xff]  }
  0xb2   : > { %v1587_v13 = vld [vmem:[%s2265_s14 + $0x64] ss:$8 sps:$4 sm:$0xff]   ;;  %v1589_v14 = vld [vmem:[%s2265_s14 + $0x60] ss:$8 sps:$4 sm:$0xff]   ;;  %v1590_v17 = vld [vmem:[%s2265_s14 + $0x74] ss:$8 sps:$4 sm:$0xff]  }
  0xb3   : > { %v326_v15 = vld [vmem:[%s2257_s13] sm:$0xff]  ;;  %v327_v16 = vld [vmem:[%s2257_s13 + $0x8] sm:$0xff]  ;;  %v328_v18 = vld [vmem:[%s2257_s13 + $0x10] sm:$0xff]  ;;  %vm760_vm0 = vcmask 1041409   ;;  %vm762_vm1 = vcmask 1042434   ;;  %vm764_vm2 = vcmask 1043459  }
  0xb4   : > { %948 = vmatpush1.bf16.msra.mxu0 %v1574_v4  ;;  %v329_v19 = vld [vmem:[%s2257_s13 + $0x18] sm:$0xff]  ;;  %v2302_v20 = vld [vmem:[%s2257_s13 + $0x20] sm:$0xff]  ;;  %v342_v21 = vunpack.c.l.bf16 %v326_v15  ;;  %v343_v22 = vunpack.c.h.bf16 %v326_v15  ;;  %v2305_v23 = vld [vmem:[%s2257_s13 + $0x28] sm:$0xff]  ;;  %v344_v26 = vunpack.c.l.bf16 %v327_v16  ;;  %v345_v27 = vunpack.c.h.bf16 %v327_v16  ;;  %s2644_s10 = sld [smem:[#allocation17_spill]] }
  0xb5   : > { %949 = vmatprep.subr.bf16.mxu0 %v1575_v5  ;;  %v2308_v24 = vld [vmem:[%s2257_s13 + $0x30] sm:$0xff]  ;;  %v2311_v25 = vld [vmem:[%s2257_s13 + $0x38] sm:$0xff]  ;;  %v346_v28 = vunpack.c.l.bf16 %v328_v18  ;;  %v347_v29 = vunpack.c.h.bf16 %v328_v18  ;;  %v2314_v30 = vld [vmem:[%s2257_s13 + $0x40] sm:$0xff]  ;;  %v348_v33 = vunpack.c.l.bf16 %v329_v19  ;;  %v349_v34 = vunpack.c.h.bf16 %v329_v19 }
  0xb6   : > { %v2317_v31 = vld [vmem:[%s2257_s13 + $0x48] sm:$0xff]  ;;  %v2320_v32 = vld [vmem:[%s2257_s13 + $0x50] sm:$0xff]  ;;  %v350_v35 = vunpack.c.l.bf16 %v2302_v20  ;;  %v351_v36 = vunpack.c.h.bf16 %v2302_v20  ;;  %v2325_v37 = vld [vmem:[%s2257_s13 + $0x58] sm:$0xff]  ;;  %v352_v39 = vunpack.c.l.bf16 %v2305_v23  ;;  %v353_v40 = vunpack.c.h.bf16 %v2305_v23 }
  0xb7   : > { %v2328_v38 = vld [vmem:[%s2257_s13 + $0x60] sm:$0xff]  ;;  %v354_v41 = vunpack.c.l.bf16 %v2308_v24  ;;  %v355_v42 = vunpack.c.h.bf16 %v2308_v24  ;;  %v2335_v43 = vld [vmem:[%s2257_s13 + $0x68] sm:$0xff]  ;;  %v2338_v44 = vld [vmem:[%s2257_s13 + $0x70] sm:$0xff]  ;;  %v356_v45 = vunpack.c.l.bf16 %v2311_v25  ;;  %v357_v46 = vunpack.c.h.bf16 %v2311_v25 }
  0xb8   : > { %950 = vmatpush1.bf16.msra.mxu0 %v1577_v6  ;;  %v358_v47 = vunpack.c.l.bf16 %v2314_v30  ;;  %v359_v48 = vunpack.c.h.bf16 %v2314_v30  ;;  %v1592_v49 = vld [vmem:[%s2265_s14 + $0x70] ss:$8 sps:$4 sm:$0xff]   ;;  %v360_v51 = vunpack.c.l.bf16 %v2317_v31  ;;  %v361_v52 = vunpack.c.h.bf16 %v2317_v31  ;;  %v1593_v55 = vld [vmem:[%s2265_s14 + $0x84] ss:$8 sps:$4 sm:$0xff]   ;;  %v1595_v60 = vld [vmem:[%s2265_s14 + $0x80] ss:$8 sps:$4 sm:$0xff]  }
  0xb9   : > { %951 = vmatprep.subr.bf16.mxu0 %v1578_v7  ;;  %v2346_v50 = vld [vmem:[%s2257_s13 + $0x78] sm:$0xff]  ;;  %v362_v53 = vunpack.c.l.bf16 %v2320_v32  ;;  %v363_v54 = vunpack.c.h.bf16 %v2320_v32  ;;  %v364_v56 = vunpack.c.l.bf16 %v2325_v37  ;;  %v365_v57 = vunpack.c.h.bf16 %v2325_v37  ;;  %v1599_v19 = vld [vmem:[%s2265_s14 + $0xa4] ss:$8 sps:$4 sm:$0xff]   ;;  %v1601_v32 = vld [vmem:[%s2265_s14 + $0xa0] ss:$8 sps:$4 sm:$0xff]  }
  0xba   : > { %v366_v58 = vunpack.c.l.bf16 %v2328_v38  ;;  %v367_v59 = vunpack.c.h.bf16 %v2328_v38  ;;  %v368_v61 = vunpack.c.l.bf16 %v2335_v43  ;;  %v369_v62 = vunpack.c.h.bf16 %v2335_v43  ;;  %v1596_v1 = vld [vmem:[%s2265_s14 + $0x94] ss:$8 sps:$4 sm:$0xff]   ;;  %p1375_p5 = scmp.ne.s32.totalorder %s2644_s10, 1 }
  0xbb   : > { %v370_v63 = vunpack.c.l.bf16 %v2338_v44  ;;  %v371_v0 = vunpack.c.h.bf16 %v2338_v44  ;;  %v372_v2 = vunpack.c.l.bf16 %v2346_v50  ;;  %v2364_v3 = vmax.f32 %v342_v21, 1e-06  ;;  %s2645_s19 = sld [smem:[#allocation27_spill]] (!%p1375_p5) }
  0xbc   : > { %952 = vmatpush1.bf16.msra.mxu0 %v1580_v8  ;;  %v375_v4 = vmax.f32 %v343_v22, 1e-06  ;;  %v2366_v5 = vmax.f32 %v344_v26, 1e-06  ;;  %v373_v6 = vunpack.c.h.bf16 %v2346_v50  ;;  %v377_v7 = vmax.f32 %v345_v27, 1e-06 }
  0xbd   : > { %953 = vmatprep.subr.bf16.mxu0 %v1581_v9  ;;  %v2369_v8 = vmax.f32 %v346_v28, 1e-06  ;;  %v379_v9 = vmax.f32 %v347_v29, 1e-06  ;;  %v383_v15 = vmax.f32 %v351_v36, 1e-06 }
  0xbe   : > { %v2376_v16 = vmax.f32 %v352_v39, 1e-06  ;;  %v409_v18 = vmul.f32 %v377_v7, %v377_v7  ;;  %v2379_v20 = vmax.f32 %v354_v41, 1e-06  ;;  %v387_v21 = vmax.f32 %v355_v42, 1e-06 }
  0xbf   : > { %v2381_v22 = vmax.f32 %v356_v45, 1e-06  ;;  %v411_v23 = vmul.f32 %v379_v9, %v379_v9  ;;  %v389_v24 = vmax.f32 %v357_v46, 1e-06  ;;  %v2383_v25 = vmax.f32 %v358_v47, 1e-06 }
  0xc0   : > { %954 = vmatpush1.bf16.msra.mxu0 %v1583_v10  ;;  %v2371_v10 = vmax.f32 %v348_v33, 1e-06  ;;  %v391_v26 = vmax.f32 %v359_v48, 1e-06  ;;  %v2385_v28 = vmax.f32 %v360_v51, 1e-06  ;;  %v415_v31 = vmul.f32 %v383_v15, %v383_v15 }
  0xc1   : > { %955 = vmatprep.subr.bf16.mxu0 %v1584_v11  ;;  %v381_v11 = vmax.f32 %v349_v34, 1e-06  ;;  %v393_v29 = vmax.f32 %v361_v52, 1e-06  ;;  %v2387_v30 = vmax.f32 %v362_v53, 1e-06  ;;  %v421_v44 = vmul.f32 %v389_v24, %v389_v24 }
  0xc2   : > { %v395_v33 = vmax.f32 %v363_v54, 1e-06  ;;  %v2390_v34 = vmax.f32 %v364_v56, 1e-06  ;;  %v2392_v37 = vmax.f32 %v366_v58, 1e-06  ;;  %v423_v48 = vmul.f32 %v391_v26, %v391_v26 }
  0xc3   : > { %v413_v27 = vmul.f32 %v381_v11, %v381_v11  ;;  %v399_v38 = vmax.f32 %v367_v59, 1e-06  ;;  %v2394_v39 = vmax.f32 %v368_v61, 1e-06  ;;  %v401_v41 = vmax.f32 %v369_v62, 1e-06 }
  0xc4   : > { %956 = vmatpush1.bf16.msra.mxu0 %v1586_v12  ;;  %v2373_v12 = vmax.f32 %v350_v35, 1e-06  ;;  %v397_v35 = vmax.f32 %v365_v57, 1e-06  ;;  %v2396_v42 = vmax.f32 %v370_v63, 1e-06  ;;  %v427_v50 = vmul.f32 %v395_v33, %v395_v33 }
  0xc5   : > { %957 = vmatprep.subr.bf16.mxu0 %v1587_v13  ;;  %v407_v13 = vmul.f32 %v375_v4, %v375_v4  ;;  %v403_v43 = vmax.f32 %v371_v0, 1e-06  ;;  %v1602_v45 = vld [vmem:[%s2265_s14 + $0xb4] ss:$8 sps:$4 sm:$0xff]   ;;  %v2399_v46 = vmax.f32 %v372_v2, 1e-06  ;;  %v431_v52 = vmul.f32 %v399_v38, %v399_v38 }
  0xc6   : > { %2640 = vst [vmem:[#allocation25_spill] sm:$0xff] %v2396_v42  ;;  %v405_v47 = vmax.f32 %v373_v6, 1e-06  ;;  %v429_v51 = vmul.f32 %v397_v35, %v397_v35  ;;  %v433_v53 = vmul.f32 %v401_v41, %v401_v41  ;;  %v441_v57 = vmul.f32 %v409_v18, %v377_v7  ;;  %v1604_v58 = vld [vmem:[%s2265_s14 + $0xb0] ss:$8 sps:$4 sm:$0xff]   ;;  %s994_s8 = sld [smem:[#allocation3]] (!%p1375_p5) }
  0xc7   : > { %2641 = vst [vmem:[#allocation26_spill] sm:$0xff] %v2399_v46  ;;  %v435_v54 = vmul.f32 %v403_v43, %v403_v43  ;;  %v439_v56 = vmul.f32 %v407_v13, %v375_v4  ;;  %v443_v59 = vmul.f32 %v411_v23, %v379_v9  ;;  %v447_v61 = vmul.f32 %v415_v31, %v383_v15  ;;  %v1605_v63 = vld [vmem:[%s2265_s14 + $0xc4] ss:$8 sps:$4 sm:$0xff]   ;;  %v1607_v9 = vld [vmem:[%s2265_s14 + $0xc0] ss:$8 sps:$4 sm:$0xff]  }
  0xc8   : > { %958 = vmatpush1.bf16.msra.mxu0 %v1589_v14  ;;  %v1598_v14 = vld [vmem:[%s2265_s14 + $0x90] ss:$8 sps:$4 sm:$0xff]   ;;  %v455_v2 = vmul.f32 %v423_v48, %v391_v26  ;;  %v463_v46 = vmul.f32 %v431_v52, %v399_v38  ;;  %v465_v42 = vmul.f32 %v433_v53, %v401_v41  ;;  %vm766_vm3 = vcmask 1044484  }
  0xc9   : > { %959 = vmatprep.subr.bf16.mxu0 %v1590_v17  ;;  %v385_v17 = vmax.f32 %v353_v40, 1e-06  ;;  %v419_v40 = vmul.f32 %v387_v21, %v387_v21  ;;  %v467_v4 = vmul.f32 %v435_v54, %v403_v43  ;;  %v477_v13 = vadd.f32 %v441_v57, %v439_v56  ;;  %v1610_v43 = vld [vmem:[%s2265_s14 + $0xd0] ss:$8 sps:$4 sm:$0xff]  }
  0xca   : > { %vm768_vm4 = vcmask 1045509   ;;  %vm770_vm5 = vcmask 1046534   ;;  %vm772_vm6 = vcmask 1047559  }
  0xcb   : > { %v417_v36 = vmul.f32 %v385_v17, %v385_v17  ;;  %v451_v0 = vmul.f32 %v419_v40, %v387_v21  ;;  %v1608_v21 = vld [vmem:[%s2265_s14 + $0xd4] ss:$8 sps:$4 sm:$0xff]  }
  0xcc   : > { %960 = vmatpush1.bf16.msra.mxu0 %v1592_v49  ;;  %v425_v49 = vmul.f32 %v393_v29, %v393_v29 }
  0xcd   : > { %961 = vmatprep.subr.bf16.mxu0 %v1593_v55  ;;  %v437_v55 = vmul.f32 %v405_v47, %v405_v47  ;;  %v449_v62 = vmul.f32 %v417_v36, %v385_v17 }
  0xce   : > { %v457_v6 = vmul.f32 %v425_v49, %v393_v29  ;;  %v1611_v49 = vld [vmem:[%s2265_s14 + $0xe4] ss:$8 sps:$4 sm:$0xff]  }
  0xcf   : > { %v469_v7 = vmul.f32 %v437_v55, %v405_v47 }
  0xd0   : > { %962 = vmatpush1.bf16.msra.mxu0 %v1595_v60  ;;  %v445_v60 = vmul.f32 %v413_v27, %v381_v11  ;;  %v505_v11 = vadd.f32 %v449_v62, %v447_v61  ;;  %v533_v17 = vadd.f32 %v457_v6, %v455_v2  ;;  %v561_v27 = vadd.f32 %v465_v42, %v463_v46 }
  0xd1   : > { %963 = vmatprep.subr.bf16.mxu0 %v1596_v1  ;;  %v453_v1 = vmul.f32 %v421_v44, %v389_v24  ;;  %v478_v24 = vrot.slane %v477_v13, 4  ;;  %v575_v29 = vadd.f32 %v469_v7, %v467_v4 }
  0xd2   : > { %v491_v18 = vadd.f32 %v445_v60, %v443_v59  ;;  %v506_v31 = vrot.slane %v505_v11, 4  ;;  %v562_v40 = vrot.slane %v561_v27, 4  ;;  %v1613_v60 = vld [vmem:[%s2265_s14 + $0xe0] ss:$8 sps:$4 sm:$0xff]  }
  0xd3   : > { %v519_v15 = vadd.f32 %v453_v1, %v451_v0  ;;  %v479_v36 = vadd.f32 %v478_v24, %v477_v13  ;;  %v576_v41 = vrot.slane %v575_v29, 4  ;;  %v1614_v1 = vld [vmem:[%s2265_s14 + $0xf4] ss:$8 sps:$4 sm:$0xff]  }
  0xd4   : > { %964 = vmatpush1.bf16.msra.mxu0 %v1598_v14  ;;  %v459_v14 = vmul.f32 %v427_v50, %v395_v33  ;;  %v492_v26 = vrot.slane %v491_v18, 4  ;;  %v534_v33 = vrot.slane %v533_v17, 4  ;;  %v507_v44 = vadd.f32 %v506_v31, %v505_v11 }
  0xd5   : > { %965 = vmatprep.subr.bf16.mxu0 %v1599_v19  ;;  %v461_v19 = vmul.f32 %v429_v51, %v397_v35  ;;  %v480_v42 = vrot.slane %v479_v36, 2  ;;  %v563_v50 = vadd.f32 %v562_v40, %v561_v27  ;;  %v577_v51 = vadd.f32 %v576_v41, %v575_v29 }
  0xd6   : > { %v493_v38 = vadd.f32 %v492_v26, %v491_v18  ;;  %v535_v47 = vadd.f32 %v534_v33, %v533_v17  ;;  %v508_v52 = vrot.slane %v507_v44, 2 }
  0xd7   : > { %v547_v23 = vadd.f32 %v461_v19, %v459_v14  ;;  %v481_v56 = vadd.f32 %v480_v42, %v479_v36  ;;  %v578_v59 = vrot.slane %v577_v51, 2  ;;  %v416_v42 = vmul.f32 %v2376_v16, %v2376_v16 }
  0xd8   : > { %966 = vmatpush1.bf16.msra.mxu0 %v1601_v32  ;;  %v520_v32 = vrot.slane %v519_v15, 4  ;;  %v494_v46 = vrot.slane %v493_v38, 2  ;;  %v536_v54 = vrot.slane %v535_v47, 2  ;;  %v509_v61 = vadd.f32 %v508_v52, %v507_v44 }
  0xd9   : > { %967 = vmatprep.subr.bf16.mxu0 %v1602_v45  ;;  %v548_v35 = vrot.slane %v547_v23, 4  ;;  %v482_v2 = vrot.slane %v481_v56, 1  ;;  %v579_v19 = vadd.f32 %v578_v59, %v577_v51  ;;  %v406_v44 = vmul.f32 %v2364_v3, %v2364_v3  ;;  %v2643_v59 = vld [vmem:[#allocation26_spill] sm:$0xff] }
  0xda   : > { %v521_v45 = vadd.f32 %v520_v32, %v519_v15  ;;  %v495_v57 = vadd.f32 %v494_v46, %v493_v38  ;;  %v510_v4 = vrot.slane %v509_v61, 1  ;;  %v418_v46 = vmul.f32 %v2379_v20, %v2379_v20 }
  0xdb   : > { %v549_v48 = vadd.f32 %v548_v35, %v547_v23  ;;  %v580_v17 = vrot.slane %v579_v19, 1  ;;  %v1616_v23 = vld [vmem:[%s2265_s14 + $0xf0] ss:$8 sps:$4 sm:$0xff]   ;;  %v422_v51 = vmul.f32 %v2383_v25, %v2383_v25  ;;  %v424_v52 = vmul.f32 %v2385_v28, %v2385_v28 }
  0xdc   : > { %968 = vmatpush1.bf16.msra.mxu0 %v1604_v58  ;;  %v522_v53 = vrot.slane %v521_v45, 2  ;;  %v564_v58 = vrot.slane %v563_v50, 2  ;;  %v496_v6 = vrot.slane %v495_v57, 1 }
  0xdd   : > { %969 = vmatprep.subr.bf16.mxu0 %v1605_v63  ;;  %v550_v55 = vrot.slane %v549_v48, 2  ;;  %v537_v63 = vadd.f32 %v536_v54, %v535_v47  ;;  %v581_v31 = vadd.f32 %v580_v17, %v579_v19  ;;  %v410_v47 = vmul.f32 %v2369_v8, %v2369_v8 }
  0xde   : > { %v523_v62 = vadd.f32 %v522_v53, %v521_v45  ;;  %v565_v14 = vadd.f32 %v564_v58, %v563_v50  ;;  %v497_v11 = vadd.f32 %v496_v6, %v495_v57  ;;  %v408_v45 = vmul.f32 %v2366_v5, %v2366_v5  ;;  %v2642_v57 = vld [vmem:[#allocation25_spill] sm:$0xff] }
  0xdf   : > { %v551_v0 = vadd.f32 %v550_v55, %v549_v48  ;;  %v538_v13 = vrot.slane %v537_v63, 1  ;;  %v412_v48 = vmul.f32 %v2371_v10, %v2371_v10  ;;  %v420_v50 = vmul.f32 %v2381_v22, %v2381_v22 }
  0xe0   : > { %970 = vmatpush1.bf16.msra.mxu0 %v1607_v9  ;;  %v524_v7 = vrot.slane %v523_v62, 1  ;;  %v483_v9 = vadd.f32 %v482_v2, %v481_v56  ;;  %v566_v15 = vrot.slane %v565_v14, 1  ;;  %v585_v33 = vmul.f32 0.0625, %v497_v11 }
  0xe1   : > { %971 = vmatprep.subr.bf16.mxu0 %v1608_v21  ;;  %v552_v18 = vrot.slane %v551_v0, 1  ;;  %v511_v21 = vadd.f32 %v510_v4, %v509_v61  ;;  %v539_v26 = vadd.f32 %v538_v13, %v537_v63  ;;  %v426_v53 = vmul.f32 %v2387_v30, %v2387_v30 }
  0xe2   : > { %v525_v24 = vadd.f32 %v524_v7, %v523_v62  ;;  %v567_v29 = vadd.f32 %v566_v15, %v565_v14  ;;  %v583_v32 = vmul.f32 0.0625, %v483_v9  ;;  %v428_v54 = vmul.f32 %v2390_v34, %v2390_v34 }
  0xe3   : > { %v553_v27 = vadd.f32 %v552_v18, %v551_v0  ;;  %v587_v35 = vmul.f32 0.0625, %v511_v21  ;;  %v591_v38 = vmul.f32 0.0625, %v539_v26  ;;  %v430_v55 = vmul.f32 %v2392_v37, %v2392_v37 }
  0xe4   : > { %972 = vmatpush1.bf16.msra.mxu0 %v1610_v43  ;;  %v589_v36 = vmul.f32 0.0625, %v525_v24  ;;  %v595_v41 = vmul.f32 0.0625, %v567_v29  ;;  %v597_v43 = vmul.f32 0.0625, %v581_v31  ;;  %1617 = vlog2.f32 %v583_v32 }
  0xe5   : > { %973 = vmatprep.subr.bf16.mxu0 %v1611_v49  ;;  %v593_v40 = vmul.f32 0.0625, %v553_v27  ;;  %1619 = vlog2.f32 %v585_v33  ;;  %v414_v49 = vmul.f32 %v2373_v12, %v2373_v12  ;;  %v432_v56 = vmul.f32 %v2394_v39, %v2394_v39 }
  0xe6   : > { %1621 = vlog2.f32 %v587_v35  ;;  %v434_v58 = vmul.f32 %v2642_v57, %v2642_v57  ;;  %v438_v61 = vmul.f32 %v406_v44, %v2364_v3  ;;  %v440_v62 = vmul.f32 %v408_v45, %v2366_v5 }
  0xe7   : > { %1623 = vlog2.f32 %v589_v36  ;;  %v442_v63 = vmul.f32 %v410_v47, %v2369_v8  ;;  %v444_v0 = vmul.f32 %v412_v48, %v2371_v10  ;;  %v448_v2 = vmul.f32 %v416_v42, %v2376_v16 }
  0xe8   : > { %974 = vmatpush1.bf16.msra.mxu0 %v1613_v60  ;;  %1625 = vlog2.f32 %v591_v38  ;;  %v436_v60 = vmul.f32 %v2643_v59, %v2643_v59  ;;  %v450_v6 = vmul.f32 %v418_v46, %v2379_v20  ;;  %v452_v14 = vmul.f32 %v420_v50, %v2381_v22 }
  0xe9   : > { %975 = vmatprep.subr.bf16.mxu0 %v1614_v1  ;;  %1627 = vlog2.f32 %v593_v40  ;;  %v446_v1 = vmul.f32 %v414_v49, %v2373_v12  ;;  %v454_v19 = vmul.f32 %v422_v51, %v2383_v25  ;;  %v456_v4 = vmul.f32 %v424_v52, %v2385_v28 }
  0xea   : > { %1629 = vlog2.f32 %v595_v41  ;;  %v458_v3 = vmul.f32 %v426_v53, %v2387_v30  ;;  %v460_v5 = vmul.f32 %v428_v54, %v2390_v34  ;;  %v2455_v8 = vmul.f32 %v430_v55, %v2392_v37 }
  0xeb   : > { %1631 = vlog2.f32 %v597_v43  ;;  %v2458_v10 = vmul.f32 %v432_v56, %v2394_v39  ;;  %v2461_v16 = vmul.f32 %v434_v58, %v2642_v57  ;;  %v2464_v20 = vmul.f32 %v436_v60, %v2643_v59 }
  0xec   : > { %976 = vmatpush1.bf16.msra.mxu0 %v1616_v23  ;;  %v470_v22 = vadd.f32 %v440_v62, %v438_v61  ;;  %v484_v25 = vadd.f32 %v444_v0, %v442_v63  ;;  %v498_v30 = vadd.f32 %v448_v2, %v446_v1  ;;  %v512_v13 = vadd.f32 %v452_v14, %v450_v6 }
  0xed   : > { %v2466_v34 = vadd.f32 %v456_v4, %v454_v19  ;;  %v2468_v11 = vadd.f32 %v460_v5, %v458_v3 }
  0xee   : > { %v1618_v12 = vpop.eup %1617  ;;  %v471_v9 = vrot.slane %v470_v22, 4  ;;  %v485_v39 = vrot.slane %v484_v25, 4  ;;  %v499_v21 = vrot.slane %v498_v30, 4  ;;  %v513_v24 = vrot.slane %v512_v13, 4 }
  0xef   : > { %v1620_v28 = vpop.eup %1619  ;;  %v601_v7 = vmul.f32 0.6931472, %v1618_v12  ;;  %v527_v6 = vrot.slane %v2466_v34, 4  ;;  %v541_v4 = vrot.slane %v2468_v11, 4 }
  0xf0   : > { %v1622_v37 = vpop.eup %1621  ;;  %v605_v18 = vmul.f32 0.6931472, %v1620_v28  ;;  %v472_v31 = vadd.f32 %v471_v9, %v470_v22  ;;  %v486_v32 = vadd.f32 %v485_v39, %v484_v25  ;;  %v500_v40 = vadd.f32 %v499_v21, %v498_v30 }
  0xf1   : > { %v1624_v15 = vpop.eup %1623  ;;  %v609_v17 = vmul.f32 0.6931472, %v1622_v37  ;;  %v631_v23 = vmul.f32 0.33333334, %v601_v7  ;;  %v514_v47 = vadd.f32 %v513_v24, %v512_v13  ;;  %v528_v12 = vadd.f32 %v527_v6, %v2466_v34 }
  0xf2   : > { %v1626_v26 = vpop.eup %1625  ;;  %v613_v27 = vmul.f32 0.6931472, %v1624_v15  ;;  %v633_v29 = vmul.f32 0.33333334, %v605_v18  ;;  %v473_v55 = vrot.slane %v472_v31, 2  ;;  %v487_v58 = vrot.slane %v486_v32, 2 }
  0xf3   : > { %v1628_v33 = vpop.eup %1627  ;;  %v617_v35 = vmul.f32 0.6931472, %v1626_v26  ;;  %v635_v36 = vmul.f32 0.33333334, %v609_v17  ;;  %v648_v38 = vmul.f32 1.442695, %v631_v23  ;;  %v554_v22 = vadd.f32 %v2458_v10, %v2455_v8 }
  0xf4   : > { %v1630_v41 = vpop.eup %1629  ;;  %v621_v43 = vmul.f32 0.6931472, %v1628_v33  ;;  %v637_v44 = vmul.f32 0.33333334, %v613_v27  ;;  %v652_v45 = vmul.f32 1.442695, %v633_v29  ;;  %v474_v60 = vadd.f32 %v473_v55, %v472_v31 }
  0xf5   : > { %v1632_v48 = vpop.eup %1631  ;;  %v625_v49 = vmul.f32 0.6931472, %v1630_v41  ;;  %v639_v42 = vmul.f32 0.33333334, %v617_v35  ;;  %1633 = vpow2.f32 %v648_v38  ;;  %v656_v46 = vmul.f32 1.442695, %v635_v36 }
  0xf6   : > { %v629_v50 = vmul.f32 0.6931472, %v1632_v48  ;;  %v641_v51 = vmul.f32 0.33333334, %v621_v43  ;;  %1635 = vpow2.f32 %v652_v45  ;;  %v660_v52 = vmul.f32 1.442695, %v637_v44 }
  0xf7   : > { %v643_v53 = vmul.f32 0.33333334, %v625_v49  ;;  %1637 = vpow2.f32 %v656_v46  ;;  %v664_v54 = vmul.f32 1.442695, %v639_v42  ;;  %v501_v61 = vrot.slane %v500_v40, 2 }
  0xf8   : > { %v645_v56 = vmul.f32 0.33333334, %v629_v50  ;;  %1639 = vpow2.f32 %v660_v52  ;;  %v668_v57 = vmul.f32 1.442695, %v641_v51  ;;  %v488_v63 = vadd.f32 %v487_v58, %v486_v32 }
  0xf9   : > { %1641 = vpow2.f32 %v664_v54  ;;  %v672_v59 = vmul.f32 1.442695, %v643_v53  ;;  %v515_v0 = vrot.slane %v514_v47, 2  ;;  %v475_v1 = vrot.slane %v474_v60, 1 }
  0xfa   : > { %1643 = vpow2.f32 %v668_v57  ;;  %v676_v62 = vmul.f32 1.442695, %v645_v56  ;;  %v502_v2 = vadd.f32 %v501_v61, %v500_v40  ;;  %v489_v14 = vrot.slane %v488_v63, 1 }
  0xfb   : > { %1645 = vpow2.f32 %v672_v59  ;;  %v516_v19 = vadd.f32 %v515_v0, %v514_v47  ;;  %v476_v3 = vadd.f32 %v475_v1, %v474_v60  ;;  %v542_v28 = vadd.f32 %v541_v4, %v2468_v11 }
  0xfc   : > { %1647 = vpow2.f32 %v676_v62  ;;  %v503_v5 = vrot.slane %v502_v2, 1  ;;  %v568_v7 = vadd.f32 %v2464_v20, %v2461_v16  ;;  %v490_v13 = vadd.f32 %v489_v14, %v488_v63 }
  0xfd   : > { %v517_v25 = vrot.slane %v516_v19, 1  ;;  %v529_v18 = vrot.slane %v528_v12, 2  ;;  %v555_v9 = vrot.slane %v554_v22, 4  ;;  %v543_v34 = vrot.slane %v542_v28, 2 }
  0xfe   : > { %v504_v37 = vadd.f32 %v503_v5, %v502_v2  ;;  %v569_v17 = vrot.slane %v568_v7, 4  ;;  %v582_v23 = vmul.f32 0.0625, %v476_v3  ;;  %v584_v42 = vmul.f32 0.0625, %v490_v13 }
  0xff   : > { %v1634_v30 = vpop.eup %1633  ;;  %v518_v21 = vadd.f32 %v517_v25, %v516_v19  ;;  %v530_v24 = vadd.f32 %v529_v18, %v528_v12  ;;  %v556_v11 = vadd.f32 %v555_v9, %v554_v22  ;;  %v544_v20 = vadd.f32 %v543_v34, %v542_v28 }
 0x100   : > { %v1636_v39 = vpop.eup %1635  ;;  %v681_v15 = vpack.c.bf16 %v1634_v30, %v1634_v30  ;;  %v570_v29 = vadd.f32 %v569_v17, %v568_v7  ;;  %v586_v1 = vmul.f32 0.0625, %v504_v37  ;;  %1649 = vlog2.f32 %v582_v23 }
 0x101   : > { %v1638_v8 = vpop.eup %1637  ;;  %v683_v10 = vpack.c.bf16 %v1636_v39, %v1636_v39  ;;  %v531_v35 = vrot.slane %v530_v24, 1  ;;  %v557_v36 = vrot.slane %v556_v11, 2  ;;  %v545_v43 = vrot.slane %v544_v20, 1 }
 0x102   : > { %v1640_v26 = vpop.eup %1639  ;;  %v685_v27 = vpack.c.bf16 %v1638_v8, %v1638_v8  ;;  %v745_v16 = vunpack.c.l.b16 %v681_v15  ;;  %v571_v44 = vrot.slane %v570_v29, 2  ;;  %v588_v14 = vmul.f32 0.0625, %v518_v21 }
 0x103   : > { %v1642_v31 = vpop.eup %1641  ;;  %v687_v32 = vpack.c.bf16 %v1640_v26, %v1640_v26  ;;  %v747_v33 = vunpack.c.l.b16 %v683_v10  ;;  %v532_v53 = vadd.f32 %v531_v35, %v530_v24  ;;  %v558_v57 = vadd.f32 %v557_v36, %v556_v11 }
 0x104   : > { %v1644_v38 = vpop.eup %1643  ;;  %v689_v40 = vpack.c.bf16 %v1642_v31, %v1642_v31  ;;  %v749_v41 = vunpack.c.l.b16 %v685_v27  ;;  %v546_v60 = vadd.f32 %v545_v43, %v544_v20  ;;  %v572_v61 = vadd.f32 %v571_v44, %v570_v29 }
 0x105   : > { %v1646_v45 = vpop.eup %1645  ;;  %v691_v47 = vpack.c.bf16 %v1644_v38, %v1644_v38  ;;  %v751_v48 = vunpack.c.l.b16 %v687_v32  ;;  %v774_v49 = vsel %vm760_vm0, %v747_v33, %v745_v16  ;;  %v559_v0 = vrot.slane %v558_v57, 1 }
 0x106   : > { %v1648_v46 = vpop.eup %1647  ;;  %v693_v50 = vpack.c.bf16 %v1646_v45, %v1646_v45  ;;  %v753_v51 = vunpack.c.l.b16 %v689_v40  ;;  %v775_v52 = vsel %vm762_vm1, %v749_v41, %v774_v49  ;;  %v573_v6 = vrot.slane %v572_v61, 1 }
 0x107   : > { %v695_v54 = vpack.c.bf16 %v1648_v46, %v1648_v46  ;;  %v755_v55 = vunpack.c.l.b16 %v691_v47  ;;  %v776_v56 = vsel %vm764_vm2, %v751_v48, %v775_v52  ;;  %v560_v4 = vadd.f32 %v559_v0, %v558_v57 }
 0x108   : > { %v757_v58 = vunpack.c.l.b16 %v693_v50  ;;  %v777_v59 = vsel %vm766_vm3, %v753_v51, %v776_v56  ;;  %v590_v3 = vmul.f32 0.0625, %v532_v53  ;;  %v574_v12 = vadd.f32 %v573_v6, %v572_v61 }
 0x109   : > { %v759_v62 = vunpack.c.l.b16 %v695_v54  ;;  %v778_v63 = vsel %vm768_vm4, %v755_v55, %v777_v59  ;;  %v592_v22 = vmul.f32 0.0625, %v546_v60  ;;  %1651 = vlog2.f32 %v584_v42 }
 0x10a   : > { %v779_v2 = vsel %vm770_vm5, %v757_v58, %v778_v63  ;;  %v594_v25 = vmul.f32 0.0625, %v560_v4  ;;  %1653 = vlog2.f32 %v586_v1  ;;  %v596_v28 = vmul.f32 0.0625, %v574_v12  ;;  %v1650_v7 = vpop.eup %1649 }
 0x10b   : > { %v780_v19 = vsel %vm772_vm6, %v759_v62, %v779_v2  ;;  %1655 = vlog2.f32 %v588_v14  ;;  %v599_v13 = vmul.f32 0.6931472, %v1650_v7  ;;  %v678_v7 = vld [vmem:[#allocation2] sm:$0xff] }
 0x10c   : > { %v782_v5 = vpack.c.b16 %v780_v19, %v780_v19  ;;  %1657 = vlog2.f32 %v590_v3 }
 0x10d   : > { %1659 = vlog2.f32 %v592_v22  ;;  %v630_v15 = vmul.f32 0.33333334, %v599_v13 }
 0x10e   : > { %977 = vmatprep.mubr.bf16.mxu0 %v782_v5  ;;  %1661 = vlog2.f32 %v594_v25 }
 0x10f   : > { %1663 = vlog2.f32 %v596_v28  ;;  %v646_v24 = vmul.f32 1.442695, %v630_v15 }
 0x111   : > { %1665 = vpow2.f32 %v646_v24 }
 0x113   : > { %v1652_v30 = vpop.eup %1651 }
 0x114   : > { %v1654_v37 = vpop.eup %1653  ;;  %v603_v18 = vmul.f32 0.6931472, %v1652_v30  ;;  %v679_v30 = vld [vmem:[#allocation2 + $0x8] sm:$0xff] }
 0x115   : > { %v1656_v9 = vpop.eup %1655  ;;  %v607_v39 = vmul.f32 0.6931472, %v1654_v37 }
 0x116   : > { %v1658_v34 = vpop.eup %1657  ;;  %v611_v17 = vmul.f32 0.6931472, %v1656_v9  ;;  %v632_v23 = vmul.f32 0.33333334, %v603_v18 }
 0x117   : > { %v1660_v8 = vpop.eup %1659  ;;  %v615_v10 = vmul.f32 0.6931472, %v1658_v34  ;;  %v634_v21 = vmul.f32 0.33333334, %v607_v39  ;;  %v999_v34 = vlaneseq (!%p1375_p5) }
 0x118   : > { %v1662_v11 = vpop.eup %1661  ;;  %v619_v26 = vmul.f32 0.6931472, %v1660_v8  ;;  %v636_v27 = vmul.f32 0.33333334, %v611_v17  ;;  %v650_v16 = vmul.f32 1.442695, %v632_v23 }
 0x119   : > { %v1664_v20 = vpop.eup %1663  ;;  %v623_v29 = vmul.f32 0.6931472, %v1662_v11  ;;  %v638_v31 = vmul.f32 0.33333334, %v615_v10  ;;  %v654_v32 = vmul.f32 1.442695, %v634_v21 }
 0x11a   : > { %v627_v33 = vmul.f32 0.6931472, %v1664_v20  ;;  %v640_v35 = vmul.f32 0.33333334, %v619_v26  ;;  %1667 = vpow2.f32 %v650_v16  ;;  %v658_v36 = vmul.f32 1.442695, %v636_v27 }
 0x11b   : > { %v642_v38 = vmul.f32 0.33333334, %v623_v29  ;;  %1669 = vpow2.f32 %v654_v32  ;;  %v662_v40 = vmul.f32 1.442695, %v638_v31  ;;  %v1666_v47 = vpop.eup %1665  ;;  %v997_v17 = vld [vmem:[%s2645_s19] sm:$0x3] (!%p1375_p5) }
 0x11c   : > { %v644_v41 = vmul.f32 0.33333334, %v627_v33  ;;  %1671 = vpow2.f32 %v658_v36  ;;  %v666_v43 = vmul.f32 1.442695, %v640_v35  ;;  %v680_v49 = vpack.c.bf16 %v1666_v47, %v1666_v47  ;;  %v1681_v23 = vld [vmem:[#allocation9 + $0x40] sm:$0xff] (!%p1375_p5)   ;;  %v1683_v11 = vld [vmem:[#allocation9 + $0x48] sm:$0xff] (!%p1375_p5)  }
 0x11d   : > { %1673 = vpow2.f32 %v662_v40  ;;  %v670_v44 = vmul.f32 1.442695, %v642_v38  ;;  %v1000_v8 = vshrl.u32 (!%p1375_p5), %v999_v34, 7  ;;  %v1682_v10 = vld [vmem:[#allocation9] sm:$0xff] (!%p1375_p5)   ;;  %1399 = vmatprep.subr.bf16.mxu0 (!%p1375_p5), %v1681_v23  ;;  %v1684_v16 = vld [vmem:[#allocation9 + $0x8] sm:$0xff] (!%p1375_p5)   ;;  %v1685_v31 = vld [vmem:[#allocation9 + $0x50] sm:$0xff] (!%p1375_p5)  }
 0x11e   : > { %1675 = vpow2.f32 %v666_v43  ;;  %v674_v45 = vmul.f32 1.442695, %v644_v41  ;;  %v744_v52 = vunpack.c.l.b16 %v680_v49  ;;  %v1686_v32 = vld [vmem:[#allocation9 + $0x10] sm:$0xff] (!%p1375_p5)   ;;  %v1687_v41 = vld [vmem:[#allocation9 + $0x58] sm:$0xff] (!%p1375_p5)   ;;  %v1691_v47 = vld [vmem:[#allocation9 + $0x68] sm:$0xff] (!%p1375_p5)  }
 0x11f   : > { %1677 = vpow2.f32 %v670_v44  ;;  %v1001_v26 = vsub.s32 (!%p1375_p5), 0, %v1000_v8  ;;  %v1005_v27 = vsub.s32 (!%p1375_p5), 1, %v1000_v8  ;;  %v1688_v43 = vld [vmem:[#allocation9 + $0x18] sm:$0xff] (!%p1375_p5)   ;;  %v1689_v44 = vld [vmem:[#allocation9 + $0x60] sm:$0xff] (!%p1375_p5)   ;;  %v1693_v49 = vld [vmem:[#allocation9 + $0x70] sm:$0xff] (!%p1375_p5)  }
 0x120   : > { %1679 = vpow2.f32 %v674_v45  ;;  %v1690_v45 = vld [vmem:[#allocation9 + $0x20] sm:$0xff] (!%p1375_p5)  }
 0x121   : > { %v1002_v20 = vrot.slane (!%p1375_p5), %v997_v17, %v1001_v26  ;;  %v1006_v29 = vrot.slane (!%p1375_p5), %v997_v17, %v1005_v27 }
 0x124   : > { %v1668_v48 = vpop.eup %1667 }
 0x125   : > { %v1670_v42 = vpop.eup %1669  ;;  %v682_v46 = vpack.c.bf16 %v1668_v48, %v1668_v48  ;;  %v1692_v48 = vld [vmem:[#allocation9 + $0x28] sm:$0xff] (!%p1375_p5)  }
 0x126   : > { %v1672_v50 = vpop.eup %1671  ;;  %v684_v51 = vpack.c.bf16 %v1670_v42, %v1670_v42  ;;  %v1694_v42 = vld [vmem:[#allocation9 + $0x30] sm:$0xff] (!%p1375_p5)  }
 0x127   : > { %v1674_v53 = vpop.eup %1673  ;;  %v686_v54 = vpack.c.bf16 %v1672_v50, %v1672_v50  ;;  %v746_v55 = vunpack.c.l.b16 %v682_v46  ;;  %v1695_v46 = vld [vmem:[#allocation9 + $0x78] sm:$0xff] (!%p1375_p5)  }
 0x128   : > { %v1676_v56 = vpop.eup %1675  ;;  %v688_v57 = vpack.c.bf16 %v1674_v53, %v1674_v53  ;;  %v748_v58 = vunpack.c.l.b16 %v684_v51  ;;  %v1696_v50 = vld [vmem:[#allocation9 + $0x38] sm:$0xff] (!%p1375_p5)   ;;  %v1018_v53 = vstv (!%p1375_p5), %s994_s8 }
 0x129   : > { %v1678_v59 = vpop.eup %1677  ;;  %v690_v60 = vpack.c.bf16 %v1676_v56, %v1676_v56  ;;  %v750_v61 = vunpack.c.l.b16 %v686_v54  ;;  %v761_v62 = vsel %vm760_vm0, %v746_v55, %v744_v52 }
 0x12a   : > { %v1680_v63 = vpop.eup %1679  ;;  %v692_v0 = vpack.c.bf16 %v1678_v59, %v1678_v59  ;;  %v752_v1 = vunpack.c.l.b16 %v688_v57  ;;  %v763_v2 = vsel %vm762_vm1, %v748_v58, %v761_v62 }
 0x12b   : > { %v694_v6 = vpack.c.bf16 %v1680_v63, %v1680_v63  ;;  %v754_v14 = vunpack.c.l.b16 %v690_v60  ;;  %v765_v19 = vsel %vm764_vm2, %v750_v61, %v763_v2 }
 0x12c   : > { %v756_v4 = vunpack.c.l.b16 %v692_v0  ;;  %v767_v3 = vsel %vm766_vm3, %v752_v1, %v765_v19 }
 0x12d   : > { %v758_v5 = vunpack.c.l.b16 %v694_v6  ;;  %v769_v12 = vsel %vm768_vm4, %v754_v14, %v767_v3 }
 0x12e   : > { %v771_v22 = vsel %vm770_vm5, %v756_v4, %v769_v12 }
 0x12f   : > { %v773_v25 = vsel %vm772_vm6, %v758_v5, %v771_v22 }
 0x130   : > { %v781_v28 = vpack.c.b16 %v773_v25, %v773_v25 }
 0x132   : > { %978 = vmatmul.mubr.bf16.vlgmr.msra.gmra.mrb[0].mxu0 %v781_v28 }
 0x133   : > { %1400 = vmatpush3.bf16.msra.mxu0 (!%p1375_p5), %v1682_v10 }
 0x134   : > { %1401 = vmatprep.subr.bf16.mxu0 (!%p1375_p5), %v1683_v11 }
 0x137   : > { %1402 = vmatpush3.bf16.msra.mxu0 (!%p1375_p5), %v1684_v16 }
 0x138   : > { %1403 = vmatprep.subr.bf16.mxu0 (!%p1375_p5), %v1685_v31 }
 0x13b   : > { %1404 = vmatpush3.bf16.msra.mxu0 (!%p1375_p5), %v1686_v32 }
 0x13c   : > { %1405 = vmatprep.subr.bf16.mxu0 (!%p1375_p5), %v1687_v41 }
 0x13f   : > { %1406 = vmatpush3.bf16.msra.mxu0 (!%p1375_p5), %v1688_v43 }
 0x140   : > { %1407 = vmatprep.subr.bf16.mxu0 (!%p1375_p5), %v1689_v44 }
 0x143   : > { %1408 = vmatpush3.bf16.msra.mxu0 (!%p1375_p5), %v1690_v45 }
 0x144   : > { %1409 = vmatprep.subr.bf16.mxu0 (!%p1375_p5), %v1691_v47 }
 0x147   : > { %1410 = vmatpush3.bf16.msra.mxu0 (!%p1375_p5), %v1692_v48 }
 0x148   : > { %1411 = vmatprep.subr.bf16.mxu0 (!%p1375_p5), %v1693_v49 }
 0x14b   : > { %1412 = vmatpush3.bf16.msra.mxu0 (!%p1375_p5), %v1694_v42 }
 0x14c   : > { %1413 = vmatprep.subr.bf16.mxu0 (!%p1375_p5), %v1695_v46 }
 0x14f   : > { %1414 = vmatpush3.bf16.msra.mxu0 (!%p1375_p5), %v1696_v50 }
 0x203   : > { %993 = sbr.rel (%p1375_p5) target bundleno = 913 (0x391), region = 60 }
 0x205   : > { %v979_v13 = vpop.f32.mrb[0].mxu0 }
 0x206   : > { %v986_v37 = vadd.f32 %v979_v13, %v678_v7  ;;  %v981_v18 = vpop.f32.mrb[1].mxu0 }
 0x207   : > { %v987_v9 = vadd.f32 %v981_v18, %v679_v30  ;;  %v983_v39 = vpop.f32.mrb[2].mxu0 }
 0x208   : > { %988 = vst [vmem:[#allocation2] sm:$0xff] %v986_v37  ;;  %v984_v15 = vpop.f32.mrb[3].mxu0 }
 0x209   : > { %989 = vst [vmem:[#allocation2 + $0x8] sm:$0xff] %v987_v9 }
 0x20f   : > { %v995_v21 = vld [vmem:[#allocation2] sm:$0xff] }
 0x210   : > { %v996_v24 = vld [vmem:[#allocation2 + $0x8] sm:$0xff]  ;;  %v1009_v33 = vadd.f32 %v1002_v20, %v995_v21 }
 0x211   : > { %v1010_v35 = vadd.f32 %v1006_v29, %v996_v24 }
 0x212   : > { %v1011_v36 = vmul.f32 %v1009_v33, %v1009_v33 }
 0x213   : > { %v1012_v38 = vmul.f32 %v1010_v35, %v1010_v35 }
 0x215   : > { %v1013_v40 = vadd.f32 %v1012_v38, %v1011_v36 }
 0x217   : > { %1014 = vadd.xlane.f32.xlu0 %v1013_v40 }
 0x2a4   : > { %v1015_v51 = vpop.xlane.xlu0 %1014 }
 0x2a5   : > { %v1016_v52 = vmax.f32 %v1015_v51, 1e-24 }
 0x2a7   : > { %1697 = vrsqrt.f32 %v1016_v52 }
 0x2b1   : > { %v1698_v54 = vpop.eup %1697 }
 0x2b2   : > { %v1019_v55 = vmul.f32 %v1698_v54, %v1018_v53 }
 0x2b4   : > { %v1021_v56 = vmul.f32 %v1019_v55, %v1010_v35  ;;  %v1020_v57 = vmul.f32 %v1019_v55, %v1009_v33 }
 0x2b6   : > { %v1023_v58 = vpack.c.bf16 %v1021_v56, %v1021_v56  ;;  %v1022_v59 = vpack.c.bf16 %v1020_v57, %v1020_v57 }
 0x2b8   : > { %1184 = vmatprep.mubr.bf16.mxu0 %v1023_v58 }
 0x2b9   : > { %1185 = vmatmul.mubr.bf16.vlgmr.msra.gmra.mrb[0].mxu0 %v1022_v59 }
 0x38c   : > { %v1415_v60 = vpop.f32.mrb[0].mxu0 }
 0x38d   : > { %v1416_v61 = vpop.f32.mrb[1].mxu0 }
 0x38e   : > { %v1417_v62 = vadd.f32 %v1416_v61, %v1415_v60  ;;  %v1418_v63 = vpop.f32.mrb[2].mxu0 }
 0x38f   : > { %v1419_v0 = vpop.f32.mrb[3].mxu0 }
 0x390   : > { %1192 = vst [vmem:[%s315_s21] sm:$0xff] %v1417_v62 }
 0x391 PF: > { %s2646_s13 = sld [smem:[#allocation18_spill]]  ;;  %s2648_s9 = sld [smem:[#allocation21_spill]] }
 0x392   : > { %s2649_s15 = sld [smem:[#allocation29_spill]]  ;;  %s1207_s11 = sshll.u32 %s315_s21, 4  ;;  %s1208_s11 = int_to_ptr.vmem [resolvable:$true] %s1207_s11 }
 0x393   : > { %s1194_s16 = scalar_lea.sflag [#allocation6], %s313_s26  ;;  %s1787_s10 = scalar_lea.vmem %s1208_s11, 128 }
 0x394   : > { %p1788_p2 = scmp.ne.s32.totalorder %s1208_s11, %s1787_s10  ;;  %s1952_s28 = smov [#allocation10]  }
 0x395   : > { %s1791_s3 = sshll.u32 %s1952_s28, 4  ;;  %s1792_s3 = int_to_ptr.vmem [resolvable:$false] %s1791_s3 }
 0x396   : > { %s1793_s19 = scalar_lea.vmem %s1792_s3, 256  ;;  %p1794_p4 = scmp.lt.s32.totalorder %s1208_s11, %s1792_s3 }
 0x397   : > { %s1393_s17 = sshll.u32 %s2646_s13, 7  ;;  %p2650_p10 = scmp.ne.s32.totalorder %s2648_s9, 0 }
 0x398   : > { %s2502_s14 = scalar_lea.hbm %s2649_s15, %s1393_s17  ;;  %p1795_p8 = scmp.lt.s32.totalorder %s1793_s19, %s1787_s10 }
 0x399   : > { %p1789_p7 = pnand %p1788_p2, %p2650_p10 }
 0x39a   : > { %p1796_p12 = por %p1795_p8, %p1794_p4 }
 0x39b   : > { %p1790_p11 = pneg %p1789_p7 }
 0x39d   : > { %p1797_p13 = pnand %p1796_p12, %p1790_p11 }
 0x39f   : > { %1800 = shalt.err (!%p1797_p13)
}
 0x3a0   : > { %s1801_s26 = scalar_lea.hbm %s2502_s14, 128  ;;  %s1805_s8 = scalar_lea.hbm %s2649_s15, 256 }
 0x3a1   : > { %p1802_p6 = scmp.ne.s32.totalorder %s2502_s14, %s1801_s26  ;;  %p1806_p3 = scmp.lt.u32.totalorder %s2502_s14, %s2649_s15 }
 0x3a2   : > { %p1807_p9 = scmp.lt.u32.totalorder %s1805_s8, %s1801_s26  ;;  %p1809_p2 = scmp.lt.u32.totalorder %s1801_s26, %s2502_s14 }
 0x3a3   : > { %p1803_p0 = pnand %p1802_p6, %p2650_p10 }
 0x3a4   : > { %p1808_p5 = por %p1807_p9, %p1806_p3 }
 0x3a5   : > { %p1804_p1 = pneg %p1803_p0 }
 0x3a6   : > { %p1810_p7 = por %p1809_p2, %p1808_p5 }
 0x3a8   : > { %p1811_p11 = pnand %p1810_p7, %p1804_p1 }
 0x3aa   : > { %1814 = shalt.err (!%p1811_p11)
}
 0x3ab   : > { %1429 = dma.vmem_to_hbm [thread:$0]  (%p2650_p10), %s1208_s11, 128, %s2502_s14, %s1194_s16  }
 0x3ac PF: > { %s2651_s17 = sld [smem:[#allocation15_spill]]  ;;  %s2652_s23 = sld [smem:[#allocation22_spill]] }
 0x3ad   : > { %p1449_p4 = scmp.ge.s32.totalorder %s1941_s7, 2 }
 0x3b2   : > { %s1219_s29 = sand.u32 1, %s2651_s17   ;;  %p2653_p8 = scmp.ne.s32.totalorder %s2652_s23, 0 }
 0x3b3   : > { %s1220_s10 = scalar_lea.sflag [#allocation6], %s1219_s29 }
 0x3b4   : > { %p1443_p12 = pnand %p1449_p4, %p2653_p8 }
 0x3b6   : > { %1884 = dma.done.wait (!%p1443_p12), %s1220_s10, 128  }
 0x3b7   : > { %1886 = vsyncadd (!%p1443_p12), %s1220_s10, 4294967168  ;;  %s25_s7 = sadd.s32 1, %s1941_s7   ;;  %s2655_s9 = sld [smem:[#allocation16_spill]] }
 0x3b8   : > { %p2530_p13 = scmp.ge.s32.totalorder %s25_s7, 6   ;;  %s2656_s14 = smov %s2146_s20 }
 0x3b9   : > { %s2657_s11 = sld [smem:[#allocation23_spill]]  ;;  %s2658_s16 = sld [smem:[#allocation24_spill]] }
 0x3ba   : > { %s2661_s21 = smov %s1897_s22  ;;  %s2662_s22 = smov %s2656_s14 }
 0x3bb   : > { %s2663_s23 = smov %s1905_s24  ;;  %s2664_s24 = smov %s1909_s25 }
 0x3bc   : > { %s2665_s25 = smov %s2204_s12  ;;  %s2666_s26 = smov %s1917_s0 }
 0x3bd   : > { %s2660_s20 = smov %s2655_s9  ;;  %s2667_s0 = smov %s1921_s27 }
 0x3be   : > { %s2668_s27 = smov %s2149_s5  ;;  %s2669_s28 = smov %s1933_s30 }
 0x3bf   : > { %s2670_s29 = smov %s1937_s6  ;;  %s2671_s30 = smov %s2657_s11 }
 0x3c0   : > { %s2672_s6 = smov %s2658_s16  ;;  %24 = sbr.rel (!%p2530_p13) target bundleno = 17 (0x11), region = 110 }
 0x3c7   :  { %1225 = vsyncpa [#allocation5], 1 }
 0x3c8   :  { %1227 = vsyncpa [#allocation5 + $0x1], 1 }
 0x3c9   :  { %1228 = vsyncpa [#allocation8], 1 }
 0x3ca   :  { %1230 = vsyncpa [#allocation8 + $0x1], 1 }
 0x3cb   :  { %1231 = vsyncpa [#allocation6], 1 }
 0x3cc   :  { %1233 = vsyncpa [#allocation6 + $0x1], 1 }

</bundles_post_ra>
